<compile_context>
chip_gen: v7x
topology: tpu7x:2x2x1
jax: 0.10.0
libtpu: 0.0.40
codegen_flags: <defaults>
</compile_context>

<pallas_src>
import functools

import jax
import jax.numpy as jnp
from jax import lax
from jax.experimental import pallas as pl
from jax.experimental.pallas import tpu as pltpu


def _round_up(n, m):
    return ((n + m - 1) // m) * m


def _output_block_kernel(x_ref, w_ref, o_ref, pad_ref, patch_ref, *, H, W, K):
    """Single step: reflect-pad -> im2col -> (Cout,40)@(40,B*LOUT) -> tanh -> compact.

    x_ref:     (B, Cin, H*W)          raw NCHW input, spatial flattened on lanes
    w_ref:     (Cout, KKCIN_PAD)      weight rows ordered [dy, dx, ci], zero-padded cols
    o_ref:     (B, Cout, H*W)         lane-dense output (wrapper bitcasts to NCHW)
    pad_ref:   (B, Cin, LIN)  scratch reflection-padded flat image (+ zero tail)
    patch_ref: (KKCIN_PAD, B*LOUT) scratch im2col matrix, batch folded into lanes
    """
    p = K // 2
    Hp, Wp = H + 2 * p, W + 2 * p
    B, Cin, _ = x_ref.shape
    KKCIN = K * K * Cin
    KKCIN_PAD, BLOUT = patch_ref.shape
    LOUT = BLOUT // B

    x = x_ref[...]                                     # (B, Cin, H*W)

    # ---- 1. reflection-padded flat image, built in-kernel ------------------
    pad_ref[...] = jnp.zeros_like(pad_ref)             # defined tail for halo over-reads

    def _reflect_row(i):                               # PyTorch ReflectionPad2d semantics
        if i < 0:
            i = -i
        if i >= H:
            i = 2 * (H - 1) - i
        return i

    for rp in range(Hp):                               # per padded row: 1 + 2p slice stores
        r = _reflect_row(rp - p)
        base = rp * Wp
        pad_ref[:, :, base + p:base + p + W] = x[:, :, r * W:(r + 1) * W]
        for j in range(p):                             # reflected column halos
            cl = r * W + (p - j)
            cr = r * W + (W - 2 - j)
            pad_ref[:, :, base + j:base + j + 1] = x[:, :, cl:cl + 1]
            pad_ref[:, :, base + p + W + j:base + p + W + j + 1] = x[:, :, cr:cr + 1]

    # ---- 2. im2col: K*K static lane shifts written ONCE into VMEM scratch --
    if KKCIN_PAD > KKCIN:
        # Zero the sublane-padding rows so the zero weight columns never meet
        # uninitialized VMEM (0 * garbage could be NaN and poison the sum).
        patch_ref[KKCIN:, :] = jnp.zeros((KKCIN_PAD - KKCIN, BLOUT), jnp.float32)
    for b in range(B):                                 # batch folded into lanes (matmul N)
        for dy in range(K):
            for dx in range(K):
                t = dy * K + dx
                s = dy * Wp + dx
                patch_ref[t * Cin:(t + 1) * Cin, b * LOUT:b * LOUT + LOUT] = \
                    pad_ref[b, :, s:s + LOUT]

    # ---- 3. single fused MXU matmul, f32 accumulation ----------------------
    y = jnp.dot(w_ref[...], patch_ref[...], preferred_element_type=jnp.float32)
    # y: (Cout, B*LOUT) — conv output over every padded anchor of every batch.

    # ---- 4. compact valid anchors in-kernel, tanh (EUP), lane-dense store --
    for b in range(B):
        rows = [y[:, b * LOUT + r * Wp: b * LOUT + r * Wp + W] for r in range(H)]
        comp = jnp.concatenate(rows, axis=1)           # (Cout, H*W), lane-dense
        o_ref[b] = jnp.tanh(comp).astype(o_ref.dtype)


def output_block_forward(x_nchw, weight_oikk, kernel_size=3):
    """Forward of _OutputBlock(input_nc, output_nc, kernel_size, use_bias=False).

    x_nchw:      (B, Cin, H, W)    float32, NCHW (PyTorch convention)
    weight_oikk: (Cout, Cin, K, K) conv weight (PyTorch OIHW convention)
    returns:     (B, Cout, H, W)   NCHW
    """
    K = kernel_size
    p = K // 2
    B, Cin, H, W = x_nchw.shape
    Cout = weight_oikk.shape[0]
    Hp, Wp = H + 2 * p, W + 2 * p
    L = Hp * Wp                               # flat padded spatial extent
    LOUT = _round_up(L, 128)                  # lane-aligned anchor extent per batch
    s_max = (K - 1) * Wp + (K - 1)            # largest flat tap shift
    LIN = _round_up(LOUT + s_max, 128)        # padded-image scratch lane extent
    KKCIN = K * K * Cin
    KKCIN_PAD = _round_up(KKCIN, 8)           # contraction dim on a sublane multiple

    # Free (bitcast) flatten of the contiguous trailing spatial dims.
    x_flat = x_nchw.reshape(B, Cin, H * W)

    # (Cout, Cin, K, K) -> (Cout, K*K*Cin) with rows ordered [dy, dx, ci] to
    # match the in-kernel im2col; zero-pad contraction dim 36 -> 40 (432 bytes).
    w_mat = jnp.transpose(weight_oikk, (0, 2, 3, 1)).reshape(Cout, KKCIN)
    w_mat = jnp.pad(w_mat, ((0, 0), (0, KKCIN_PAD - KKCIN)))

    kernel = functools.partial(_output_block_kernel, H=H, W=W, K=K)
    out_flat = pl.pallas_call(
        kernel,
        out_shape=jax.ShapeDtypeStruct((B, Cout, H * W), x_nchw.dtype),
        grid=(1,),                            # single step: batch folded into lanes
        in_specs=[
            pl.BlockSpec((B, Cin, H * W), lambda i: (0, 0, 0)),
            pl.BlockSpec((Cout, KKCIN_PAD), lambda i: (0, 0)),
        ],
        out_specs=pl.BlockSpec((B, Cout, H * W), lambda i: (0, 0, 0)),
        scratch_shapes=[
            pltpu.VMEM((B, Cin, LIN), jnp.float32),          # reflect-padded flat image
            pltpu.VMEM((KKCIN_PAD, B * LOUT), jnp.float32),  # im2col patches
        ],
    )(x_flat, w_mat)

    # Free (bitcast) split of the lane-dense output back to NCHW.
    return out_flat.reshape(B, Cout, H, W)


def _reference_forward(x_nchw, weight_oikk, kernel_size=3):
    """Pure-JAX reference: ReflectionPad2d + Conv2d(no bias) + Tanh, NCHW."""
    p = kernel_size // 2
    xp = jnp.pad(x_nchw, ((0, 0), (0, 0), (p, p), (p, p)), mode="reflect")
    y = lax.conv_general_dilated(
        xp, weight_oikk,
        window_strides=(1, 1), padding="VALID",
        dimension_numbers=("NCHW", "OIHW", "NCHW"),
        precision=lax.Precision.HIGHEST)
    return jnp.tanh(y)


if __name__ == "__main__":
    key = jax.random.PRNGKey(0)
    k_x, k_w = jax.random.split(key)

    # Small shapes consistent with the module: batch=2, input_nc=4, output_nc=3,
    # spatial 16x16, kernel_size=3, use_bias=False (module default).
    B, Cin, Cout, Hs, Ws, K = 2, 4, 3, 16, 16, 3

    x = jax.random.normal(k_x, (B, Cin, Hs, Ws), dtype=jnp.float32)
    fan_in = Cin * K * K
    bound = 1.0 / (fan_in ** 0.5)
    weight = jax.random.uniform(k_w, (Cout, Cin, K, K),
                                minval=-bound, maxval=bound, dtype=jnp.float32)

    fwd = jax.jit(output_block_forward, static_argnames=("kernel_size",))
    out = jax.block_until_ready(fwd(x, weight, kernel_size=K))
    ref = jax.block_until_ready(_reference_forward(x, weight, kernel_size=K))

    assert out.shape == (B, Cout, Hs, Ws)
    assert jnp.allclose(out, ref, atol=1e-4, rtol=1e-4), \
        f"max abs err = {float(jnp.max(jnp.abs(out - ref)))}"
    print("KERNEL_OK")
</pallas_src>

<mosaic_0001>
module attributes {stable_mosaic.version = 11 : i64} {
  func.func @_output_block_kernel(%arg0: i32, %arg1: memref<2x4x256xf32, #tpu.memory_space<vmem>>, %arg2: memref<3x40xf32, #tpu.memory_space<vmem>>, %arg3: memref<2x3x256xf32, #tpu.memory_space<vmem>>, %arg4: memref<2x4x512xf32, #tpu.memory_space<vmem>>, %arg5: memref<40x768xf32, #tpu.memory_space<vmem>>) attributes {dimension_semantics = [#tpu.dimension_semantics<arbitrary>], iteration_bounds = array<i64: 1>, scalar_prefetch = 0 : i64, scratch_operands = 2 : i64, tpu.core_type = #tpu.core_type<tc>, window_params = [{pipeline_mode = #tpu.pipeline_mode<synchronous>, transform_indices = @transform_0, window_bounds = array<i64: 2, 4, 256>}, {pipeline_mode = #tpu.pipeline_mode<synchronous>, transform_indices = @transform_1, window_bounds = array<i64: 3, 40>}, {pipeline_mode = #tpu.pipeline_mode<synchronous>, transform_indices = @transform_2, window_bounds = array<i64: 2, 3, 256>}]} {
    %c0 = arith.constant 0 : index
    %c0_0 = arith.constant 0 : index
    %c0_1 = arith.constant 0 : index
    %0 = vector.load %arg1[%c0, %c0_0, %c0_1] : memref<2x4x256xf32, #tpu.memory_space<vmem>>, vector<2x4x256xf32>
    %cst = arith.constant 0.000000e+00 : f32
    %1 = vector.broadcast %cst : f32 to vector<2x4x512xf32>
    %c0_2 = arith.constant 0 : index
    %c0_3 = arith.constant 0 : index
    %c0_4 = arith.constant 0 : index
    %2 = vector.load %arg4[%c0_2, %c0_3, %c0_4] : memref<2x4x512xf32, #tpu.memory_space<vmem>>, vector<2x4x512xf32>
    tpu.vector_store %arg4[%c0_2, %c0_3, %c0_4], %1 {strides = array<i32>} : memref<2x4x512xf32, #tpu.memory_space<vmem>>, vector<2x4x512xf32>,
    %3 = vector.extract_strided_slice %0 {offsets = [0, 0, 16], sizes = [2, 4, 16], strides = [1, 1, 1]} : vector<2x4x256xf32> to vector<2x4x16xf32>
    %c0_5 = arith.constant 0 : index
    %c0_6 = arith.constant 0 : index
    %c1 = arith.constant 1 : index
    %4 = vector.load %arg4[%c0_5, %c0_6, %c1] : memref<2x4x512xf32, #tpu.memory_space<vmem>>, vector<2x4x16xf32>
    tpu.vector_store %arg4[%c0_5, %c0_6, %c1], %3 {strides = array<i32>} : memref<2x4x512xf32, #tpu.memory_space<vmem>>, vector<2x4x16xf32>,
    %5 = vector.extract_strided_slice %0 {offsets = [0, 0, 17], sizes = [2, 4, 1], strides = [1, 1, 1]} : vector<2x4x256xf32> to vector<2x4x1xf32>
    %c0_7 = arith.constant 0 : index
    %c0_8 = arith.constant 0 : index
    %c0_9 = arith.constant 0 : index
    %6 = vector.load %arg4[%c0_7, %c0_8, %c0_9] : memref<2x4x512xf32, #tpu.memory_space<vmem>>, vector<2x4x1xf32>
    tpu.vector_store %arg4[%c0_7, %c0_8, %c0_9], %5 {strides = array<i32>} : memref<2x4x512xf32, #tpu.memory_space<vmem>>, vector<2x4x1xf32>,
    %7 = vector.extract_strided_slice %0 {offsets = [0, 0, 30], sizes = [2, 4, 1], strides = [1, 1, 1]} : vector<2x4x256xf32> to vector<2x4x1xf32>
    %c0_10 = arith.constant 0 : index
    %c0_11 = arith.constant 0 : index
    %c17 = arith.constant 17 : index
    %8 = vector.load %arg4[%c0_10, %c0_11, %c17] : memref<2x4x512xf32, #tpu.memory_space<vmem>>, vector<2x4x1xf32>
    tpu.vector_store %arg4[%c0_10, %c0_11, %c17], %7 {strides = array<i32>} : memref<2x4x512xf32, #tpu.memory_space<vmem>>, vector<2x4x1xf32>,
    %9 = vector.extract_strided_slice %0 {offsets = [0, 0, 0], sizes = [2, 4, 16], strides = [1, 1, 1]} : vector<2x4x256xf32> to vector<2x4x16xf32>
    %c0_12 = arith.constant 0 : index
    %c0_13 = arith.constant 0 : index
    %c19 = arith.constant 19 : index
    %10 = vector.load %arg4[%c0_12, %c0_13, %c19] : memref<2x4x512xf32, #tpu.memory_space<vmem>>, vector<2x4x16xf32>
    tpu.vector_store %arg4[%c0_12, %c0_13, %c19], %9 {strides = array<i32>} : memref<2x4x512xf32, #tpu.memory_space<vmem>>, vector<2x4x16xf32>,
    %11 = vector.extract_strided_slice %0 {offsets = [0, 0, 1], sizes = [2, 4, 1], strides = [1, 1, 1]} : vector<2x4x256xf32> to vector<2x4x1xf32>
    %c0_14 = arith.constant 0 : index
    %c0_15 = arith.constant 0 : index
    %c18 = arith.constant 18 : index
    %12 = vector.load %arg4[%c0_14, %c0_15, %c18] : memref<2x4x512xf32, #tpu.memory_space<vmem>>, vector<2x4x1xf32>
    tpu.vector_store %arg4[%c0_14, %c0_15, %c18], %11 {strides = array<i32>} : memref<2x4x512xf32, #tpu.memory_space<vmem>>, vector<2x4x1xf32>,
    %13 = vector.extract_strided_slice %0 {offsets = [0, 0, 14], sizes = [2, 4, 1], strides = [1, 1, 1]} : vector<2x4x256xf32> to vector<2x4x1xf32>
    %c0_16 = arith.constant 0 : index
    %c0_17 = arith.constant 0 : index
    %c35 = arith.constant 35 : index
    %14 = vector.load %arg4[%c0_16, %c0_17, %c35] : memref<2x4x512xf32, #tpu.memory_space<vmem>>, vector<2x4x1xf32>
    tpu.vector_store %arg4[%c0_16, %c0_17, %c35], %13 {strides = array<i32>} : memref<2x4x512xf32, #tpu.memory_space<vmem>>, vector<2x4x1xf32>,
    %15 = vector.extract_strided_slice %0 {offsets = [0, 0, 16], sizes = [2, 4, 16], strides = [1, 1, 1]} : vector<2x4x256xf32> to vector<2x4x16xf32>
    %c0_18 = arith.constant 0 : index
    %c0_19 = arith.constant 0 : index
    %c37 = arith.constant 37 : index
    %16 = vector.load %arg4[%c0_18, %c0_19, %c37] : memref<2x4x512xf32, #tpu.memory_space<vmem>>, vector<2x4x16xf32>
    tpu.vector_store %arg4[%c0_18, %c0_19, %c37], %15 {strides = array<i32>} : memref<2x4x512xf32, #tpu.memory_space<vmem>>, vector<2x4x16xf32>,
    %17 = vector.extract_strided_slice %0 {offsets = [0, 0, 17], sizes = [2, 4, 1], strides = [1, 1, 1]} : vector<2x4x256xf32> to vector<2x4x1xf32>
    %c0_20 = arith.constant 0 : index
    %c0_21 = arith.constant 0 : index
    %c36 = arith.constant 36 : index
    %18 = vector.load %arg4[%c0_20, %c0_21, %c36] : memref<2x4x512xf32, #tpu.memory_space<vmem>>, vector<2x4x1xf32>
    tpu.vector_store %arg4[%c0_20, %c0_21, %c36], %17 {strides = array<i32>} : memref<2x4x512xf32, #tpu.memory_space<vmem>>, vector<2x4x1xf32>,
    %19 = vector.extract_strided_slice %0 {offsets = [0, 0, 30], sizes = [2, 4, 1], strides = [1, 1, 1]} : vector<2x4x256xf32> to vector<2x4x1xf32>
    %c0_22 = arith.constant 0 : index
    %c0_23 = arith.constant 0 : index
    %c53 = arith.constant 53 : index
    %20 = vector.load %arg4[%c0_22, %c0_23, %c53] : memref<2x4x512xf32, #tpu.memory_space<vmem>>, vector<2x4x1xf32>
    tpu.vector_store %arg4[%c0_22, %c0_23, %c53], %19 {strides = array<i32>} : memref<2x4x512xf32, #tpu.memory_space<vmem>>, vector<2x4x1xf32>,
    %21 = vector.extract_strided_slice %0 {offsets = [0, 0, 32], sizes = [2, 4, 16], strides = [1, 1, 1]} : vector<2x4x256xf32> to vector<2x4x16xf32>
    %c0_24 = arith.constant 0 : index
    %c0_25 = arith.constant 0 : index
    %c55 = arith.constant 55 : index
    %22 = vector.load %arg4[%c0_24, %c0_25, %c55] : memref<2x4x512xf32, #tpu.memory_space<vmem>>, vector<2x4x16xf32>
    tpu.vector_store %arg4[%c0_24, %c0_25, %c55], %21 {strides = array<i32>} : memref<2x4x512xf32, #tpu.memory_space<vmem>>, vector<2x4x16xf32>,
    %23 = vector.extract_strided_slice %0 {offsets = [0, 0, 33], sizes = [2, 4, 1], strides = [1, 1, 1]} : vector<2x4x256xf32> to vector<2x4x1xf32>
    %c0_26 = arith.constant 0 : index
    %c0_27 = arith.constant 0 : index
    %c54 = arith.constant 54 : index
    %24 = vector.load %arg4[%c0_26, %c0_27, %c54] : memref<2x4x512xf32, #tpu.memory_space<vmem>>, vector<2x4x1xf32>
    tpu.vector_store %arg4[%c0_26, %c0_27, %c54], %23 {strides = array<i32>} : memref<2x4x512xf32, #tpu.memory_space<vmem>>, vector<2x4x1xf32>,
    %25 = vector.extract_strided_slice %0 {offsets = [0, 0, 46], sizes = [2, 4, 1], strides = [1, 1, 1]} : vector<2x4x256xf32> to vector<2x4x1xf32>
    %c0_28 = arith.constant 0 : index
    %c0_29 = arith.constant 0 : index
    %c71 = arith.constant 71 : index
    %26 = vector.load %arg4[%c0_28, %c0_29, %c71] : memref<2x4x512xf32, #tpu.memory_space<vmem>>, vector<2x4x1xf32>
    tpu.vector_store %arg4[%c0_28, %c0_29, %c71], %25 {strides = array<i32>} : memref<2x4x512xf32, #tpu.memory_space<vmem>>, vector<2x4x1xf32>,
    %27 = vector.extract_strided_slice %0 {offsets = [0, 0, 48], sizes = [2, 4, 16], strides = [1, 1, 1]} : vector<2x4x256xf32> to vector<2x4x16xf32>
    %c0_30 = arith.constant 0 : index
    %c0_31 = arith.constant 0 : index
    %c73 = arith.constant 73 : index
    %28 = vector.load %arg4[%c0_30, %c0_31, %c73] : memref<2x4x512xf32, #tpu.memory_space<vmem>>, vector<2x4x16xf32>
    tpu.vector_store %arg4[%c0_30, %c0_31, %c73], %27 {strides = array<i32>} : memref<2x4x512xf32, #tpu.memory_space<vmem>>, vector<2x4x16xf32>,
    %29 = vector.extract_strided_slice %0 {offsets = [0, 0, 49], sizes = [2, 4, 1], strides = [1, 1, 1]} : vector<2x4x256xf32> to vector<2x4x1xf32>
    %c0_32 = arith.constant 0 : index
    %c0_33 = arith.constant 0 : index
    %c72 = arith.constant 72 : index
    %30 = vector.load %arg4[%c0_32, %c0_33, %c72] : memref<2x4x512xf32, #tpu.memory_space<vmem>>, vector<2x4x1xf32>
    tpu.vector_store %arg4[%c0_32, %c0_33, %c72], %29 {strides = array<i32>} : memref<2x4x512xf32, #tpu.memory_space<vmem>>, vector<2x4x1xf32>,
    %31 = vector.extract_strided_slice %0 {offsets = [0, 0, 62], sizes = [2, 4, 1], strides = [1, 1, 1]} : vector<2x4x256xf32> to vector<2x4x1xf32>
    %c0_34 = arith.constant 0 : index
    %c0_35 = arith.constant 0 : index
    %c89 = arith.constant 89 : index
    %32 = vector.load %arg4[%c0_34, %c0_35, %c89] : memref<2x4x512xf32, #tpu.memory_space<vmem>>, vector<2x4x1xf32>
    tpu.vector_store %arg4[%c0_34, %c0_35, %c89], %31 {strides = array<i32>} : memref<2x4x512xf32, #tpu.memory_space<vmem>>, vector<2x4x1xf32>,
    %33 = vector.extract_strided_slice %0 {offsets = [0, 0, 64], sizes = [2, 4, 16], strides = [1, 1, 1]} : vector<2x4x256xf32> to vector<2x4x16xf32>
    %c0_36 = arith.constant 0 : index
    %c0_37 = arith.constant 0 : index
    %c91 = arith.constant 91 : index
    %34 = vector.load %arg4[%c0_36, %c0_37, %c91] : memref<2x4x512xf32, #tpu.memory_space<vmem>>, vector<2x4x16xf32>
    tpu.vector_store %arg4[%c0_36, %c0_37, %c91], %33 {strides = array<i32>} : memref<2x4x512xf32, #tpu.memory_space<vmem>>, vector<2x4x16xf32>,
    %35 = vector.extract_strided_slice %0 {offsets = [0, 0, 65], sizes = [2, 4, 1], strides = [1, 1, 1]} : vector<2x4x256xf32> to vector<2x4x1xf32>
    %c0_38 = arith.constant 0 : index
    %c0_39 = arith.constant 0 : index
    %c90 = arith.constant 90 : index
    %36 = vector.load %arg4[%c0_38, %c0_39, %c90] : memref<2x4x512xf32, #tpu.memory_space<vmem>>, vector<2x4x1xf32>
    tpu.vector_store %arg4[%c0_38, %c0_39, %c90], %35 {strides = array<i32>} : memref<2x4x512xf32, #tpu.memory_space<vmem>>, vector<2x4x1xf32>,
    %37 = vector.extract_strided_slice %0 {offsets = [0, 0, 78], sizes = [2, 4, 1], strides = [1, 1, 1]} : vector<2x4x256xf32> to vector<2x4x1xf32>
    %c0_40 = arith.constant 0 : index
    %c0_41 = arith.constant 0 : index
    %c107 = arith.constant 107 : index
    %38 = vector.load %arg4[%c0_40, %c0_41, %c107] : memref<2x4x512xf32, #tpu.memory_space<vmem>>, vector<2x4x1xf32>
    tpu.vector_store %arg4[%c0_40, %c0_41, %c107], %37 {strides = array<i32>} : memref<2x4x512xf32, #tpu.memory_space<vmem>>, vector<2x4x1xf32>,
    %39 = vector.extract_strided_slice %0 {offsets = [0, 0, 80], sizes = [2, 4, 16], strides = [1, 1, 1]} : vector<2x4x256xf32> to vector<2x4x16xf32>
    %c0_42 = arith.constant 0 : index
    %c0_43 = arith.constant 0 : index
    %c109 = arith.constant 109 : index
    %40 = vector.load %arg4[%c0_42, %c0_43, %c109] : memref<2x4x512xf32, #tpu.memory_space<vmem>>, vector<2x4x16xf32>
    tpu.vector_store %arg4[%c0_42, %c0_43, %c109], %39 {strides = array<i32>} : memref<2x4x512xf32, #tpu.memory_space<vmem>>, vector<2x4x16xf32>,
    %41 = vector.extract_strided_slice %0 {offsets = [0, 0, 81], sizes = [2, 4, 1], strides = [1, 1, 1]} : vector<2x4x256xf32> to vector<2x4x1xf32>
    %c0_44 = arith.constant 0 : index
    %c0_45 = arith.constant 0 : index
    %c108 = arith.constant 108 : index
    %42 = vector.load %arg4[%c0_44, %c0_45, %c108] : memref<2x4x512xf32, #tpu.memory_space<vmem>>, vector<2x4x1xf32>
    tpu.vector_store %arg4[%c0_44, %c0_45, %c108], %41 {strides = array<i32>} : memref<2x4x512xf32, #tpu.memory_space<vmem>>, vector<2x4x1xf32>,
    %43 = vector.extract_strided_slice %0 {offsets = [0, 0, 94], sizes = [2, 4, 1], strides = [1, 1, 1]} : vector<2x4x256xf32> to vector<2x4x1xf32>
    %c0_46 = arith.constant 0 : index
    %c0_47 = arith.constant 0 : index
    %c125 = arith.constant 125 : index
    %44 = vector.load %arg4[%c0_46, %c0_47, %c125] : memref<2x4x512xf32, #tpu.memory_space<vmem>>, vector<2x4x1xf32>
    tpu.vector_store %arg4[%c0_46, %c0_47, %c125], %43 {strides = array<i32>} : memref<2x4x512xf32, #tpu.memory_space<vmem>>, vector<2x4x1xf32>,
    %45 = vector.extract_strided_slice %0 {offsets = [0, 0, 96], sizes = [2, 4, 16], strides = [1, 1, 1]} : vector<2x4x256xf32> to vector<2x4x16xf32>
    %c0_48 = arith.constant 0 : index
    %c0_49 = arith.constant 0 : index
    %c127 = arith.constant 127 : index
    %46 = vector.load %arg4[%c0_48, %c0_49, %c127] : memref<2x4x512xf32, #tpu.memory_space<vmem>>, vector<2x4x16xf32>
    tpu.vector_store %arg4[%c0_48, %c0_49, %c127], %45 {strides = array<i32>} : memref<2x4x512xf32, #tpu.memory_space<vmem>>, vector<2x4x16xf32>,
    %47 = vector.extract_strided_slice %0 {offsets = [0, 0, 97], sizes = [2, 4, 1], strides = [1, 1, 1]} : vector<2x4x256xf32> to vector<2x4x1xf32>
    %c0_50 = arith.constant 0 : index
    %c0_51 = arith.constant 0 : index
    %c126 = arith.constant 126 : index
    %48 = vector.load %arg4[%c0_50, %c0_51, %c126] : memref<2x4x512xf32, #tpu.memory_space<vmem>>, vector<2x4x1xf32>
    tpu.vector_store %arg4[%c0_50, %c0_51, %c126], %47 {strides = array<i32>} : memref<2x4x512xf32, #tpu.memory_space<vmem>>, vector<2x4x1xf32>,
    %49 = vector.extract_strided_slice %0 {offsets = [0, 0, 110], sizes = [2, 4, 1], strides = [1, 1, 1]} : vector<2x4x256xf32> to vector<2x4x1xf32>
    %c0_52 = arith.constant 0 : index
    %c0_53 = arith.constant 0 : index
    %c143 = arith.constant 143 : index
    %50 = vector.load %arg4[%c0_52, %c0_53, %c143] : memref<2x4x512xf32, #tpu.memory_space<vmem>>, vector<2x4x1xf32>
    tpu.vector_store %arg4[%c0_52, %c0_53, %c143], %49 {strides = array<i32>} : memref<2x4x512xf32, #tpu.memory_space<vmem>>, vector<2x4x1xf32>,
    %51 = vector.extract_strided_slice %0 {offsets = [0, 0, 112], sizes = [2, 4, 16], strides = [1, 1, 1]} : vector<2x4x256xf32> to vector<2x4x16xf32>
    %c0_54 = arith.constant 0 : index
    %c0_55 = arith.constant 0 : index
    %c145 = arith.constant 145 : index
    %52 = vector.load %arg4[%c0_54, %c0_55, %c145] : memref<2x4x512xf32, #tpu.memory_space<vmem>>, vector<2x4x16xf32>
    tpu.vector_store %arg4[%c0_54, %c0_55, %c145], %51 {strides = array<i32>} : memref<2x4x512xf32, #tpu.memory_space<vmem>>, vector<2x4x16xf32>,
    %53 = vector.extract_strided_slice %0 {offsets = [0, 0, 113], sizes = [2, 4, 1], strides = [1, 1, 1]} : vector<2x4x256xf32> to vector<2x4x1xf32>
    %c0_56 = arith.constant 0 : index
    %c0_57 = arith.constant 0 : index
    %c144 = arith.constant 144 : index
    %54 = vector.load %arg4[%c0_56, %c0_57, %c144] : memref<2x4x512xf32, #tpu.memory_space<vmem>>, vector<2x4x1xf32>
    tpu.vector_store %arg4[%c0_56, %c0_57, %c144], %53 {strides = array<i32>} : memref<2x4x512xf32, #tpu.memory_space<vmem>>, vector<2x4x1xf32>,
    %55 = vector.extract_strided_slice %0 {offsets = [0, 0, 126], sizes = [2, 4, 1], strides = [1, 1, 1]} : vector<2x4x256xf32> to vector<2x4x1xf32>
    %c0_58 = arith.constant 0 : index
    %c0_59 = arith.constant 0 : index
    %c161 = arith.constant 161 : index
    %56 = vector.load %arg4[%c0_58, %c0_59, %c161] : memref<2x4x512xf32, #tpu.memory_space<vmem>>, vector<2x4x1xf32>
    tpu.vector_store %arg4[%c0_58, %c0_59, %c161], %55 {strides = array<i32>} : memref<2x4x512xf32, #tpu.memory_space<vmem>>, vector<2x4x1xf32>,
    %57 = vector.extract_strided_slice %0 {offsets = [0, 0, 128], sizes = [2, 4, 16], strides = [1, 1, 1]} : vector<2x4x256xf32> to vector<2x4x16xf32>
    %c0_60 = arith.constant 0 : index
    %c0_61 = arith.constant 0 : index
    %c163 = arith.constant 163 : index
    %58 = vector.load %arg4[%c0_60, %c0_61, %c163] : memref<2x4x512xf32, #tpu.memory_space<vmem>>, vector<2x4x16xf32>
    tpu.vector_store %arg4[%c0_60, %c0_61, %c163], %57 {strides = array<i32>} : memref<2x4x512xf32, #tpu.memory_space<vmem>>, vector<2x4x16xf32>,
    %59 = vector.extract_strided_slice %0 {offsets = [0, 0, 129], sizes = [2, 4, 1], strides = [1, 1, 1]} : vector<2x4x256xf32> to vector<2x4x1xf32>
    %c0_62 = arith.constant 0 : index
    %c0_63 = arith.constant 0 : index
    %c162 = arith.constant 162 : index
    %60 = vector.load %arg4[%c0_62, %c0_63, %c162] : memref<2x4x512xf32, #tpu.memory_space<vmem>>, vector<2x4x1xf32>
    tpu.vector_store %arg4[%c0_62, %c0_63, %c162], %59 {strides = array<i32>} : memref<2x4x512xf32, #tpu.memory_space<vmem>>, vector<2x4x1xf32>,
    %61 = vector.extract_strided_slice %0 {offsets = [0, 0, 142], sizes = [2, 4, 1], strides = [1, 1, 1]} : vector<2x4x256xf32> to vector<2x4x1xf32>
    %c0_64 = arith.constant 0 : index
    %c0_65 = arith.constant 0 : index
    %c179 = arith.constant 179 : index
    %62 = vector.load %arg4[%c0_64, %c0_65, %c179] : memref<2x4x512xf32, #tpu.memory_space<vmem>>, vector<2x4x1xf32>
    tpu.vector_store %arg4[%c0_64, %c0_65, %c179], %61 {strides = array<i32>} : memref<2x4x512xf32, #tpu.memory_space<vmem>>, vector<2x4x1xf32>,
    %63 = vector.extract_strided_slice %0 {offsets = [0, 0, 144], sizes = [2, 4, 16], strides = [1, 1, 1]} : vector<2x4x256xf32> to vector<2x4x16xf32>
    %c0_66 = arith.constant 0 : index
    %c0_67 = arith.constant 0 : index
    %c181 = arith.constant 181 : index
    %64 = vector.load %arg4[%c0_66, %c0_67, %c181] : memref<2x4x512xf32, #tpu.memory_space<vmem>>, vector<2x4x16xf32>
    tpu.vector_store %arg4[%c0_66, %c0_67, %c181], %63 {strides = array<i32>} : memref<2x4x512xf32, #tpu.memory_space<vmem>>, vector<2x4x16xf32>,
    %65 = vector.extract_strided_slice %0 {offsets = [0, 0, 145], sizes = [2, 4, 1], strides = [1, 1, 1]} : vector<2x4x256xf32> to vector<2x4x1xf32>
    %c0_68 = arith.constant 0 : index
    %c0_69 = arith.constant 0 : index
    %c180 = arith.constant 180 : index
    %66 = vector.load %arg4[%c0_68, %c0_69, %c180] : memref<2x4x512xf32, #tpu.memory_space<vmem>>, vector<2x4x1xf32>
    tpu.vector_store %arg4[%c0_68, %c0_69, %c180], %65 {strides = array<i32>} : memref<2x4x512xf32, #tpu.memory_space<vmem>>, vector<2x4x1xf32>,
    %67 = vector.extract_strided_slice %0 {offsets = [0, 0, 158], sizes = [2, 4, 1], strides = [1, 1, 1]} : vector<2x4x256xf32> to vector<2x4x1xf32>
    %c0_70 = arith.constant 0 : index
    %c0_71 = arith.constant 0 : index
    %c197 = arith.constant 197 : index
    %68 = vector.load %arg4[%c0_70, %c0_71, %c197] : memref<2x4x512xf32, #tpu.memory_space<vmem>>, vector<2x4x1xf32>
    tpu.vector_store %arg4[%c0_70, %c0_71, %c197], %67 {strides = array<i32>} : memref<2x4x512xf32, #tpu.memory_space<vmem>>, vector<2x4x1xf32>,
    %69 = vector.extract_strided_slice %0 {offsets = [0, 0, 160], sizes = [2, 4, 16], strides = [1, 1, 1]} : vector<2x4x256xf32> to vector<2x4x16xf32>
    %c0_72 = arith.constant 0 : index
    %c0_73 = arith.constant 0 : index
    %c199 = arith.constant 199 : index
    %70 = vector.load %arg4[%c0_72, %c0_73, %c199] : memref<2x4x512xf32, #tpu.memory_space<vmem>>, vector<2x4x16xf32>
    tpu.vector_store %arg4[%c0_72, %c0_73, %c199], %69 {strides = array<i32>} : memref<2x4x512xf32, #tpu.memory_space<vmem>>, vector<2x4x16xf32>,
    %71 = vector.extract_strided_slice %0 {offsets = [0, 0, 161], sizes = [2, 4, 1], strides = [1, 1, 1]} : vector<2x4x256xf32> to vector<2x4x1xf32>
    %c0_74 = arith.constant 0 : index
    %c0_75 = arith.constant 0 : index
    %c198 = arith.constant 198 : index
    %72 = vector.load %arg4[%c0_74, %c0_75, %c198] : memref<2x4x512xf32, #tpu.memory_space<vmem>>, vector<2x4x1xf32>
    tpu.vector_store %arg4[%c0_74, %c0_75, %c198], %71 {strides = array<i32>} : memref<2x4x512xf32, #tpu.memory_space<vmem>>, vector<2x4x1xf32>,
    %73 = vector.extract_strided_slice %0 {offsets = [0, 0, 174], sizes = [2, 4, 1], strides = [1, 1, 1]} : vector<2x4x256xf32> to vector<2x4x1xf32>
    %c0_76 = arith.constant 0 : index
    %c0_77 = arith.constant 0 : index
    %c215 = arith.constant 215 : index
    %74 = vector.load %arg4[%c0_76, %c0_77, %c215] : memref<2x4x512xf32, #tpu.memory_space<vmem>>, vector<2x4x1xf32>
    tpu.vector_store %arg4[%c0_76, %c0_77, %c215], %73 {strides = array<i32>} : memref<2x4x512xf32, #tpu.memory_space<vmem>>, vector<2x4x1xf32>,
    %75 = vector.extract_strided_slice %0 {offsets = [0, 0, 176], sizes = [2, 4, 16], strides = [1, 1, 1]} : vector<2x4x256xf32> to vector<2x4x16xf32>
    %c0_78 = arith.constant 0 : index
    %c0_79 = arith.constant 0 : index
    %c217 = arith.constant 217 : index
    %76 = vector.load %arg4[%c0_78, %c0_79, %c217] : memref<2x4x512xf32, #tpu.memory_space<vmem>>, vector<2x4x16xf32>
    tpu.vector_store %arg4[%c0_78, %c0_79, %c217], %75 {strides = array<i32>} : memref<2x4x512xf32, #tpu.memory_space<vmem>>, vector<2x4x16xf32>,
    %77 = vector.extract_strided_slice %0 {offsets = [0, 0, 177], sizes = [2, 4, 1], strides = [1, 1, 1]} : vector<2x4x256xf32> to vector<2x4x1xf32>
    %c0_80 = arith.constant 0 : index
    %c0_81 = arith.constant 0 : index
    %c216 = arith.constant 216 : index
    %78 = vector.load %arg4[%c0_80, %c0_81, %c216] : memref<2x4x512xf32, #tpu.memory_space<vmem>>, vector<2x4x1xf32>
    tpu.vector_store %arg4[%c0_80, %c0_81, %c216], %77 {strides = array<i32>} : memref<2x4x512xf32, #tpu.memory_space<vmem>>, vector<2x4x1xf32>,
    %79 = vector.extract_strided_slice %0 {offsets = [0, 0, 190], sizes = [2, 4, 1], strides = [1, 1, 1]} : vector<2x4x256xf32> to vector<2x4x1xf32>
    %c0_82 = arith.constant 0 : index
    %c0_83 = arith.constant 0 : index
    %c233 = arith.constant 233 : index
    %80 = vector.load %arg4[%c0_82, %c0_83, %c233] : memref<2x4x512xf32, #tpu.memory_space<vmem>>, vector<2x4x1xf32>
    tpu.vector_store %arg4[%c0_82, %c0_83, %c233], %79 {strides = array<i32>} : memref<2x4x512xf32, #tpu.memory_space<vmem>>, vector<2x4x1xf32>,
    %81 = vector.extract_strided_slice %0 {offsets = [0, 0, 192], sizes = [2, 4, 16], strides = [1, 1, 1]} : vector<2x4x256xf32> to vector<2x4x16xf32>
    %c0_84 = arith.constant 0 : index
    %c0_85 = arith.constant 0 : index
    %c235 = arith.constant 235 : index
    %82 = vector.load %arg4[%c0_84, %c0_85, %c235] : memref<2x4x512xf32, #tpu.memory_space<vmem>>, vector<2x4x16xf32>
    tpu.vector_store %arg4[%c0_84, %c0_85, %c235], %81 {strides = array<i32>} : memref<2x4x512xf32, #tpu.memory_space<vmem>>, vector<2x4x16xf32>,
    %83 = vector.extract_strided_slice %0 {offsets = [0, 0, 193], sizes = [2, 4, 1], strides = [1, 1, 1]} : vector<2x4x256xf32> to vector<2x4x1xf32>
    %c0_86 = arith.constant 0 : index
    %c0_87 = arith.constant 0 : index
    %c234 = arith.constant 234 : index
    %84 = vector.load %arg4[%c0_86, %c0_87, %c234] : memref<2x4x512xf32, #tpu.memory_space<vmem>>, vector<2x4x1xf32>
    tpu.vector_store %arg4[%c0_86, %c0_87, %c234], %83 {strides = array<i32>} : memref<2x4x512xf32, #tpu.memory_space<vmem>>, vector<2x4x1xf32>,
    %85 = vector.extract_strided_slice %0 {offsets = [0, 0, 206], sizes = [2, 4, 1], strides = [1, 1, 1]} : vector<2x4x256xf32> to vector<2x4x1xf32>
    %c0_88 = arith.constant 0 : index
    %c0_89 = arith.constant 0 : index
    %c251 = arith.constant 251 : index
    %86 = vector.load %arg4[%c0_88, %c0_89, %c251] : memref<2x4x512xf32, #tpu.memory_space<vmem>>, vector<2x4x1xf32>
    tpu.vector_store %arg4[%c0_88, %c0_89, %c251], %85 {strides = array<i32>} : memref<2x4x512xf32, #tpu.memory_space<vmem>>, vector<2x4x1xf32>,
    %87 = vector.extract_strided_slice %0 {offsets = [0, 0, 208], sizes = [2, 4, 16], strides = [1, 1, 1]} : vector<2x4x256xf32> to vector<2x4x16xf32>
    %c0_90 = arith.constant 0 : index
    %c0_91 = arith.constant 0 : index
    %c253 = arith.constant 253 : index
    %88 = vector.load %arg4[%c0_90, %c0_91, %c253] : memref<2x4x512xf32, #tpu.memory_space<vmem>>, vector<2x4x16xf32>
    tpu.vector_store %arg4[%c0_90, %c0_91, %c253], %87 {strides = array<i32>} : memref<2x4x512xf32, #tpu.memory_space<vmem>>, vector<2x4x16xf32>,
    %89 = vector.extract_strided_slice %0 {offsets = [0, 0, 209], sizes = [2, 4, 1], strides = [1, 1, 1]} : vector<2x4x256xf32> to vector<2x4x1xf32>
    %c0_92 = arith.constant 0 : index
    %c0_93 = arith.constant 0 : index
    %c252 = arith.constant 252 : index
    %90 = vector.load %arg4[%c0_92, %c0_93, %c252] : memref<2x4x512xf32, #tpu.memory_space<vmem>>, vector<2x4x1xf32>
    tpu.vector_store %arg4[%c0_92, %c0_93, %c252], %89 {strides = array<i32>} : memref<2x4x512xf32, #tpu.memory_space<vmem>>, vector<2x4x1xf32>,
    %91 = vector.extract_strided_slice %0 {offsets = [0, 0, 222], sizes = [2, 4, 1], strides = [1, 1, 1]} : vector<2x4x256xf32> to vector<2x4x1xf32>
    %c0_94 = arith.constant 0 : index
    %c0_95 = arith.constant 0 : index
    %c269 = arith.constant 269 : index
    %92 = vector.load %arg4[%c0_94, %c0_95, %c269] : memref<2x4x512xf32, #tpu.memory_space<vmem>>, vector<2x4x1xf32>
    tpu.vector_store %arg4[%c0_94, %c0_95, %c269], %91 {strides = array<i32>} : memref<2x4x512xf32, #tpu.memory_space<vmem>>, vector<2x4x1xf32>,
    %93 = vector.extract_strided_slice %0 {offsets = [0, 0, 224], sizes = [2, 4, 16], strides = [1, 1, 1]} : vector<2x4x256xf32> to vector<2x4x16xf32>
    %c0_96 = arith.constant 0 : index
    %c0_97 = arith.constant 0 : index
    %c271 = arith.constant 271 : index
    %94 = vector.load %arg4[%c0_96, %c0_97, %c271] : memref<2x4x512xf32, #tpu.memory_space<vmem>>, vector<2x4x16xf32>
    tpu.vector_store %arg4[%c0_96, %c0_97, %c271], %93 {strides = array<i32>} : memref<2x4x512xf32, #tpu.memory_space<vmem>>, vector<2x4x16xf32>,
    %95 = vector.extract_strided_slice %0 {offsets = [0, 0, 225], sizes = [2, 4, 1], strides = [1, 1, 1]} : vector<2x4x256xf32> to vector<2x4x1xf32>
    %c0_98 = arith.constant 0 : index
    %c0_99 = arith.constant 0 : index
    %c270 = arith.constant 270 : index
    %96 = vector.load %arg4[%c0_98, %c0_99, %c270] : memref<2x4x512xf32, #tpu.memory_space<vmem>>, vector<2x4x1xf32>
    tpu.vector_store %arg4[%c0_98, %c0_99, %c270], %95 {strides = array<i32>} : memref<2x4x512xf32, #tpu.memory_space<vmem>>, vector<2x4x1xf32>,
    %97 = vector.extract_strided_slice %0 {offsets = [0, 0, 238], sizes = [2, 4, 1], strides = [1, 1, 1]} : vector<2x4x256xf32> to vector<2x4x1xf32>
    %c0_100 = arith.constant 0 : index
    %c0_101 = arith.constant 0 : index
    %c287 = arith.constant 287 : index
    %98 = vector.load %arg4[%c0_100, %c0_101, %c287] : memref<2x4x512xf32, #tpu.memory_space<vmem>>, vector<2x4x1xf32>
    tpu.vector_store %arg4[%c0_100, %c0_101, %c287], %97 {strides = array<i32>} : memref<2x4x512xf32, #tpu.memory_space<vmem>>, vector<2x4x1xf32>,
    %99 = vector.extract_strided_slice %0 {offsets = [0, 0, 240], sizes = [2, 4, 16], strides = [1, 1, 1]} : vector<2x4x256xf32> to vector<2x4x16xf32>
    %c0_102 = arith.constant 0 : index
    %c0_103 = arith.constant 0 : index
    %c289 = arith.constant 289 : index
    %100 = vector.load %arg4[%c0_102, %c0_103, %c289] : memref<2x4x512xf32, #tpu.memory_space<vmem>>, vector<2x4x16xf32>
    tpu.vector_store %arg4[%c0_102, %c0_103, %c289], %99 {strides = array<i32>} : memref<2x4x512xf32, #tpu.memory_space<vmem>>, vector<2x4x16xf32>,
    %101 = vector.extract_strided_slice %0 {offsets = [0, 0, 241], sizes = [2, 4, 1], strides = [1, 1, 1]} : vector<2x4x256xf32> to vector<2x4x1xf32>
    %c0_104 = arith.constant 0 : index
    %c0_105 = arith.constant 0 : index
    %c288 = arith.constant 288 : index
    %102 = vector.load %arg4[%c0_104, %c0_105, %c288] : memref<2x4x512xf32, #tpu.memory_space<vmem>>, vector<2x4x1xf32>
    tpu.vector_store %arg4[%c0_104, %c0_105, %c288], %101 {strides = array<i32>} : memref<2x4x512xf32, #tpu.memory_space<vmem>>, vector<2x4x1xf32>,
    %103 = vector.extract_strided_slice %0 {offsets = [0, 0, 254], sizes = [2, 4, 1], strides = [1, 1, 1]} : vector<2x4x256xf32> to vector<2x4x1xf32>
    %c0_106 = arith.constant 0 : index
    %c0_107 = arith.constant 0 : index
    %c305 = arith.constant 305 : index
    %104 = vector.load %arg4[%c0_106, %c0_107, %c305] : memref<2x4x512xf32, #tpu.memory_space<vmem>>, vector<2x4x1xf32>
    tpu.vector_store %arg4[%c0_106, %c0_107, %c305], %103 {strides = array<i32>} : memref<2x4x512xf32, #tpu.memory_space<vmem>>, vector<2x4x1xf32>,
    %105 = vector.extract_strided_slice %0 {offsets = [0, 0, 224], sizes = [2, 4, 16], strides = [1, 1, 1]} : vector<2x4x256xf32> to vector<2x4x16xf32>
    %c0_108 = arith.constant 0 : index
    %c0_109 = arith.constant 0 : index
    %c307 = arith.constant 307 : index
    %106 = vector.load %arg4[%c0_108, %c0_109, %c307] : memref<2x4x512xf32, #tpu.memory_space<vmem>>, vector<2x4x16xf32>
    tpu.vector_store %arg4[%c0_108, %c0_109, %c307], %105 {strides = array<i32>} : memref<2x4x512xf32, #tpu.memory_space<vmem>>, vector<2x4x16xf32>,
    %107 = vector.extract_strided_slice %0 {offsets = [0, 0, 225], sizes = [2, 4, 1], strides = [1, 1, 1]} : vector<2x4x256xf32> to vector<2x4x1xf32>
    %c0_110 = arith.constant 0 : index
    %c0_111 = arith.constant 0 : index
    %c306 = arith.constant 306 : index
    %108 = vector.load %arg4[%c0_110, %c0_111, %c306] : memref<2x4x512xf32, #tpu.memory_space<vmem>>, vector<2x4x1xf32>
    tpu.vector_store %arg4[%c0_110, %c0_111, %c306], %107 {strides = array<i32>} : memref<2x4x512xf32, #tpu.memory_space<vmem>>, vector<2x4x1xf32>,
    %109 = vector.extract_strided_slice %0 {offsets = [0, 0, 238], sizes = [2, 4, 1], strides = [1, 1, 1]} : vector<2x4x256xf32> to vector<2x4x1xf32>
    %c0_112 = arith.constant 0 : index
    %c0_113 = arith.constant 0 : index
    %c323 = arith.constant 323 : index
    %110 = vector.load %arg4[%c0_112, %c0_113, %c323] : memref<2x4x512xf32, #tpu.memory_space<vmem>>, vector<2x4x1xf32>
    tpu.vector_store %arg4[%c0_112, %c0_113, %c323], %109 {strides = array<i32>} : memref<2x4x512xf32, #tpu.memory_space<vmem>>, vector<2x4x1xf32>,
    %cst_114 = arith.constant 0.000000e+00 : f32
    %111 = vector.broadcast %cst_114 : f32 to vector<4x768xf32>
    %c36_115 = arith.constant 36 : index
    %c0_116 = arith.constant 0 : index
    %112 = vector.load %arg5[%c36_115, %c0_116] : memref<40x768xf32, #tpu.memory_space<vmem>>, vector<4x768xf32>
    tpu.vector_store %arg5[%c36_115, %c0_116], %111 {strides = array<i32>} : memref<40x768xf32, #tpu.memory_space<vmem>>, vector<4x768xf32>,
    %c0_117 = arith.constant 0 : index
    %c0_118 = arith.constant 0 : index
    %c0_119 = arith.constant 0 : index
    %113 = vector.load %arg4[%c0_117, %c0_118, %c0_119] : memref<2x4x512xf32, #tpu.memory_space<vmem>>, vector<1x4x384xf32>
    %114 = vector.shape_cast %113 : vector<1x4x384xf32> to vector<4x384xf32>
    %c0_120 = arith.constant 0 : index
    %c0_121 = arith.constant 0 : index
    %115 = vector.load %arg5[%c0_120, %c0_121] : memref<40x768xf32, #tpu.memory_space<vmem>>, vector<4x384xf32>
    tpu.vector_store %arg5[%c0_120, %c0_121], %114 {strides = array<i32>} : memref<40x768xf32, #tpu.memory_space<vmem>>, vector<4x384xf32>,
    %c0_122 = arith.constant 0 : index
    %c0_123 = arith.constant 0 : index
    %c1_124 = arith.constant 1 : index
    %116 = vector.load %arg4[%c0_122, %c0_123, %c1_124] : memref<2x4x512xf32, #tpu.memory_space<vmem>>, vector<1x4x384xf32>
    %117 = vector.shape_cast %116 : vector<1x4x384xf32> to vector<4x384xf32>
    %c4 = arith.constant 4 : index
    %c0_125 = arith.constant 0 : index
    %118 = vector.load %arg5[%c4, %c0_125] : memref<40x768xf32, #tpu.memory_space<vmem>>, vector<4x384xf32>
    tpu.vector_store %arg5[%c4, %c0_125], %117 {strides = array<i32>} : memref<40x768xf32, #tpu.memory_space<vmem>>, vector<4x384xf32>,
    %c0_126 = arith.constant 0 : index
    %c0_127 = arith.constant 0 : index
    %c2 = arith.constant 2 : index
    %119 = vector.load %arg4[%c0_126, %c0_127, %c2] : memref<2x4x512xf32, #tpu.memory_space<vmem>>, vector<1x4x384xf32>
    %120 = vector.shape_cast %119 : vector<1x4x384xf32> to vector<4x384xf32>
    %c8 = arith.constant 8 : index
    %c0_128 = arith.constant 0 : index
    %121 = vector.load %arg5[%c8, %c0_128] : memref<40x768xf32, #tpu.memory_space<vmem>>, vector<4x384xf32>
    tpu.vector_store %arg5[%c8, %c0_128], %120 {strides = array<i32>} : memref<40x768xf32, #tpu.memory_space<vmem>>, vector<4x384xf32>,
    %c0_129 = arith.constant 0 : index
    %c0_130 = arith.constant 0 : index
    %c18_131 = arith.constant 18 : index
    %122 = vector.load %arg4[%c0_129, %c0_130, %c18_131] : memref<2x4x512xf32, #tpu.memory_space<vmem>>, vector<1x4x384xf32>
    %123 = vector.shape_cast %122 : vector<1x4x384xf32> to vector<4x384xf32>
    %c12 = arith.constant 12 : index
    %c0_132 = arith.constant 0 : index
    %124 = vector.load %arg5[%c12, %c0_132] : memref<40x768xf32, #tpu.memory_space<vmem>>, vector<4x384xf32>
    tpu.vector_store %arg5[%c12, %c0_132], %123 {strides = array<i32>} : memref<40x768xf32, #tpu.memory_space<vmem>>, vector<4x384xf32>,
    %c0_133 = arith.constant 0 : index
    %c0_134 = arith.constant 0 : index
    %c19_135 = arith.constant 19 : index
    %125 = vector.load %arg4[%c0_133, %c0_134, %c19_135] : memref<2x4x512xf32, #tpu.memory_space<vmem>>, vector<1x4x384xf32>
    %126 = vector.shape_cast %125 : vector<1x4x384xf32> to vector<4x384xf32>
    %c16 = arith.constant 16 : index
    %c0_136 = arith.constant 0 : index
    %127 = vector.load %arg5[%c16, %c0_136] : memref<40x768xf32, #tpu.memory_space<vmem>>, vector<4x384xf32>
    tpu.vector_store %arg5[%c16, %c0_136], %126 {strides = array<i32>} : memref<40x768xf32, #tpu.memory_space<vmem>>, vector<4x384xf32>,
    %c0_137 = arith.constant 0 : index
    %c0_138 = arith.constant 0 : index
    %c20 = arith.constant 20 : index
    %128 = vector.load %arg4[%c0_137, %c0_138, %c20] : memref<2x4x512xf32, #tpu.memory_space<vmem>>, vector<1x4x384xf32>
    %129 = vector.shape_cast %128 : vector<1x4x384xf32> to vector<4x384xf32>
    %c20_139 = arith.constant 20 : index
    %c0_140 = arith.constant 0 : index
    %130 = vector.load %arg5[%c20_139, %c0_140] : memref<40x768xf32, #tpu.memory_space<vmem>>, vector<4x384xf32>
    tpu.vector_store %arg5[%c20_139, %c0_140], %129 {strides = array<i32>} : memref<40x768xf32, #tpu.memory_space<vmem>>, vector<4x384xf32>,
    %c0_141 = arith.constant 0 : index
    %c0_142 = arith.constant 0 : index
    %c36_143 = arith.constant 36 : index
    %131 = vector.load %arg4[%c0_141, %c0_142, %c36_143] : memref<2x4x512xf32, #tpu.memory_space<vmem>>, vector<1x4x384xf32>
    %132 = vector.shape_cast %131 : vector<1x4x384xf32> to vector<4x384xf32>
    %c24 = arith.constant 24 : index
    %c0_144 = arith.constant 0 : index
    %133 = vector.load %arg5[%c24, %c0_144] : memref<40x768xf32, #tpu.memory_space<vmem>>, vector<4x384xf32>
    tpu.vector_store %arg5[%c24, %c0_144], %132 {strides = array<i32>} : memref<40x768xf32, #tpu.memory_space<vmem>>, vector<4x384xf32>,
    %c0_145 = arith.constant 0 : index
    %c0_146 = arith.constant 0 : index
    %c37_147 = arith.constant 37 : index
    %134 = vector.load %arg4[%c0_145, %c0_146, %c37_147] : memref<2x4x512xf32, #tpu.memory_space<vmem>>, vector<1x4x384xf32>
    %135 = vector.shape_cast %134 : vector<1x4x384xf32> to vector<4x384xf32>
    %c28 = arith.constant 28 : index
    %c0_148 = arith.constant 0 : index
    %136 = vector.load %arg5[%c28, %c0_148] : memref<40x768xf32, #tpu.memory_space<vmem>>, vector<4x384xf32>
    tpu.vector_store %arg5[%c28, %c0_148], %135 {strides = array<i32>} : memref<40x768xf32, #tpu.memory_space<vmem>>, vector<4x384xf32>,
    %c0_149 = arith.constant 0 : index
    %c0_150 = arith.constant 0 : index
    %c38 = arith.constant 38 : index
    %137 = vector.load %arg4[%c0_149, %c0_150, %c38] : memref<2x4x512xf32, #tpu.memory_space<vmem>>, vector<1x4x384xf32>
    %138 = vector.shape_cast %137 : vector<1x4x384xf32> to vector<4x384xf32>
    %c32 = arith.constant 32 : index
    %c0_151 = arith.constant 0 : index
    %139 = vector.load %arg5[%c32, %c0_151] : memref<40x768xf32, #tpu.memory_space<vmem>>, vector<4x384xf32>
    tpu.vector_store %arg5[%c32, %c0_151], %138 {strides = array<i32>} : memref<40x768xf32, #tpu.memory_space<vmem>>, vector<4x384xf32>,
    %c1_152 = arith.constant 1 : index
    %c0_153 = arith.constant 0 : index
    %c0_154 = arith.constant 0 : index
    %140 = vector.load %arg4[%c1_152, %c0_153, %c0_154] : memref<2x4x512xf32, #tpu.memory_space<vmem>>, vector<1x4x384xf32>
    %141 = vector.shape_cast %140 : vector<1x4x384xf32> to vector<4x384xf32>
    %c0_155 = arith.constant 0 : index
    %c384 = arith.constant 384 : index
    %142 = vector.load %arg5[%c0_155, %c384] : memref<40x768xf32, #tpu.memory_space<vmem>>, vector<4x384xf32>
    tpu.vector_store %arg5[%c0_155, %c384], %141 {strides = array<i32>} : memref<40x768xf32, #tpu.memory_space<vmem>>, vector<4x384xf32>,
    %c1_156 = arith.constant 1 : index
    %c0_157 = arith.constant 0 : index
    %c1_158 = arith.constant 1 : index
    %143 = vector.load %arg4[%c1_156, %c0_157, %c1_158] : memref<2x4x512xf32, #tpu.memory_space<vmem>>, vector<1x4x384xf32>
    %144 = vector.shape_cast %143 : vector<1x4x384xf32> to vector<4x384xf32>
    %c4_159 = arith.constant 4 : index
    %c384_160 = arith.constant 384 : index
    %145 = vector.load %arg5[%c4_159, %c384_160] : memref<40x768xf32, #tpu.memory_space<vmem>>, vector<4x384xf32>
    tpu.vector_store %arg5[%c4_159, %c384_160], %144 {strides = array<i32>} : memref<40x768xf32, #tpu.memory_space<vmem>>, vector<4x384xf32>,
    %c1_161 = arith.constant 1 : index
    %c0_162 = arith.constant 0 : index
    %c2_163 = arith.constant 2 : index
    %146 = vector.load %arg4[%c1_161, %c0_162, %c2_163] : memref<2x4x512xf32, #tpu.memory_space<vmem>>, vector<1x4x384xf32>
    %147 = vector.shape_cast %146 : vector<1x4x384xf32> to vector<4x384xf32>
    %c8_164 = arith.constant 8 : index
    %c384_165 = arith.constant 384 : index
    %148 = vector.load %arg5[%c8_164, %c384_165] : memref<40x768xf32, #tpu.memory_space<vmem>>, vector<4x384xf32>
    tpu.vector_store %arg5[%c8_164, %c384_165], %147 {strides = array<i32>} : memref<40x768xf32, #tpu.memory_space<vmem>>, vector<4x384xf32>,
    %c1_166 = arith.constant 1 : index
    %c0_167 = arith.constant 0 : index
    %c18_168 = arith.constant 18 : index
    %149 = vector.load %arg4[%c1_166, %c0_167, %c18_168] : memref<2x4x512xf32, #tpu.memory_space<vmem>>, vector<1x4x384xf32>
    %150 = vector.shape_cast %149 : vector<1x4x384xf32> to vector<4x384xf32>
    %c12_169 = arith.constant 12 : index
    %c384_170 = arith.constant 384 : index
    %151 = vector.load %arg5[%c12_169, %c384_170] : memref<40x768xf32, #tpu.memory_space<vmem>>, vector<4x384xf32>
    tpu.vector_store %arg5[%c12_169, %c384_170], %150 {strides = array<i32>} : memref<40x768xf32, #tpu.memory_space<vmem>>, vector<4x384xf32>,
    %c1_171 = arith.constant 1 : index
    %c0_172 = arith.constant 0 : index
    %c19_173 = arith.constant 19 : index
    %152 = vector.load %arg4[%c1_171, %c0_172, %c19_173] : memref<2x4x512xf32, #tpu.memory_space<vmem>>, vector<1x4x384xf32>
    %153 = vector.shape_cast %152 : vector<1x4x384xf32> to vector<4x384xf32>
    %c16_174 = arith.constant 16 : index
    %c384_175 = arith.constant 384 : index
    %154 = vector.load %arg5[%c16_174, %c384_175] : memref<40x768xf32, #tpu.memory_space<vmem>>, vector<4x384xf32>
    tpu.vector_store %arg5[%c16_174, %c384_175], %153 {strides = array<i32>} : memref<40x768xf32, #tpu.memory_space<vmem>>, vector<4x384xf32>,
    %c1_176 = arith.constant 1 : index
    %c0_177 = arith.constant 0 : index
    %c20_178 = arith.constant 20 : index
    %155 = vector.load %arg4[%c1_176, %c0_177, %c20_178] : memref<2x4x512xf32, #tpu.memory_space<vmem>>, vector<1x4x384xf32>
    %156 = vector.shape_cast %155 : vector<1x4x384xf32> to vector<4x384xf32>
    %c20_179 = arith.constant 20 : index
    %c384_180 = arith.constant 384 : index
    %157 = vector.load %arg5[%c20_179, %c384_180] : memref<40x768xf32, #tpu.memory_space<vmem>>, vector<4x384xf32>
    tpu.vector_store %arg5[%c20_179, %c384_180], %156 {strides = array<i32>} : memref<40x768xf32, #tpu.memory_space<vmem>>, vector<4x384xf32>,
    %c1_181 = arith.constant 1 : index
    %c0_182 = arith.constant 0 : index
    %c36_183 = arith.constant 36 : index
    %158 = vector.load %arg4[%c1_181, %c0_182, %c36_183] : memref<2x4x512xf32, #tpu.memory_space<vmem>>, vector<1x4x384xf32>
    %159 = vector.shape_cast %158 : vector<1x4x384xf32> to vector<4x384xf32>
    %c24_184 = arith.constant 24 : index
    %c384_185 = arith.constant 384 : index
    %160 = vector.load %arg5[%c24_184, %c384_185] : memref<40x768xf32, #tpu.memory_space<vmem>>, vector<4x384xf32>
    tpu.vector_store %arg5[%c24_184, %c384_185], %159 {strides = array<i32>} : memref<40x768xf32, #tpu.memory_space<vmem>>, vector<4x384xf32>,
    %c1_186 = arith.constant 1 : index
    %c0_187 = arith.constant 0 : index
    %c37_188 = arith.constant 37 : index
    %161 = vector.load %arg4[%c1_186, %c0_187, %c37_188] : memref<2x4x512xf32, #tpu.memory_space<vmem>>, vector<1x4x384xf32>
    %162 = vector.shape_cast %161 : vector<1x4x384xf32> to vector<4x384xf32>
    %c28_189 = arith.constant 28 : index
    %c384_190 = arith.constant 384 : index
    %163 = vector.load %arg5[%c28_189, %c384_190] : memref<40x768xf32, #tpu.memory_space<vmem>>, vector<4x384xf32>
    tpu.vector_store %arg5[%c28_189, %c384_190], %162 {strides = array<i32>} : memref<40x768xf32, #tpu.memory_space<vmem>>, vector<4x384xf32>,
    %c1_191 = arith.constant 1 : index
    %c0_192 = arith.constant 0 : index
    %c38_193 = arith.constant 38 : index
    %164 = vector.load %arg4[%c1_191, %c0_192, %c38_193] : memref<2x4x512xf32, #tpu.memory_space<vmem>>, vector<1x4x384xf32>
    %165 = vector.shape_cast %164 : vector<1x4x384xf32> to vector<4x384xf32>
    %c32_194 = arith.constant 32 : index
    %c384_195 = arith.constant 384 : index
    %166 = vector.load %arg5[%c32_194, %c384_195] : memref<40x768xf32, #tpu.memory_space<vmem>>, vector<4x384xf32>
    tpu.vector_store %arg5[%c32_194, %c384_195], %165 {strides = array<i32>} : memref<40x768xf32, #tpu.memory_space<vmem>>, vector<4x384xf32>,
    %c0_196 = arith.constant 0 : index
    %c0_197 = arith.constant 0 : index
    %167 = vector.load %arg2[%c0_196, %c0_197] : memref<3x40xf32, #tpu.memory_space<vmem>>, vector<3x40xf32>
    %c0_198 = arith.constant 0 : index
    %c0_199 = arith.constant 0 : index
    %168 = vector.load %arg5[%c0_198, %c0_199] : memref<40x768xf32, #tpu.memory_space<vmem>>, vector<40x768xf32>
    %cst_200 = arith.constant dense<0.000000e+00> : vector<3x768xf32>
    %169 = tpu.matmul %167, %168, %cst_200 {dimension_numbers = #tpu.dot_dimension_numbers<[1], [0], [0], [1], [0, 0, 1, 1], [], []>} : vector<3x40xf32>, vector<40x768xf32>, vector<3x768xf32> -> vector<3x768xf32>
    %170 = vector.extract_strided_slice %169 {offsets = [0, 0], sizes = [3, 16], strides = [1, 1]} : vector<3x768xf32> to vector<3x16xf32>
    %171 = vector.extract_strided_slice %169 {offsets = [0, 18], sizes = [3, 16], strides = [1, 1]} : vector<3x768xf32> to vector<3x16xf32>
    %172 = vector.extract_strided_slice %169 {offsets = [0, 36], sizes = [3, 16], strides = [1, 1]} : vector<3x768xf32> to vector<3x16xf32>
    %173 = vector.extract_strided_slice %169 {offsets = [0, 54], sizes = [3, 16], strides = [1, 1]} : vector<3x768xf32> to vector<3x16xf32>
    %174 = vector.extract_strided_slice %169 {offsets = [0, 72], sizes = [3, 16], strides = [1, 1]} : vector<3x768xf32> to vector<3x16xf32>
    %175 = vector.extract_strided_slice %169 {offsets = [0, 90], sizes = [3, 16], strides = [1, 1]} : vector<3x768xf32> to vector<3x16xf32>
    %176 = vector.extract_strided_slice %169 {offsets = [0, 108], sizes = [3, 16], strides = [1, 1]} : vector<3x768xf32> to vector<3x16xf32>
    %177 = vector.extract_strided_slice %169 {offsets = [0, 126], sizes = [3, 16], strides = [1, 1]} : vector<3x768xf32> to vector<3x16xf32>
    %178 = vector.extract_strided_slice %169 {offsets = [0, 144], sizes = [3, 16], strides = [1, 1]} : vector<3x768xf32> to vector<3x16xf32>
    %179 = vector.extract_strided_slice %169 {offsets = [0, 162], sizes = [3, 16], strides = [1, 1]} : vector<3x768xf32> to vector<3x16xf32>
    %180 = vector.extract_strided_slice %169 {offsets = [0, 180], sizes = [3, 16], strides = [1, 1]} : vector<3x768xf32> to vector<3x16xf32>
    %181 = vector.extract_strided_slice %169 {offsets = [0, 198], sizes = [3, 16], strides = [1, 1]} : vector<3x768xf32> to vector<3x16xf32>
    %182 = vector.extract_strided_slice %169 {offsets = [0, 216], sizes = [3, 16], strides = [1, 1]} : vector<3x768xf32> to vector<3x16xf32>
    %183 = vector.extract_strided_slice %169 {offsets = [0, 234], sizes = [3, 16], strides = [1, 1]} : vector<3x768xf32> to vector<3x16xf32>
    %184 = vector.extract_strided_slice %169 {offsets = [0, 252], sizes = [3, 16], strides = [1, 1]} : vector<3x768xf32> to vector<3x16xf32>
    %185 = vector.extract_strided_slice %169 {offsets = [0, 270], sizes = [3, 16], strides = [1, 1]} : vector<3x768xf32> to vector<3x16xf32>
    %186 = tpu.concatenate %170, %171, %172, %173, %174, %175, %176, %177, %178, %179, %180, %181, %182, %183, %184, %185 in 1 : vector<3x16xf32>, vector<3x16xf32>, vector<3x16xf32>, vector<3x16xf32>, vector<3x16xf32>, vector<3x16xf32>, vector<3x16xf32>, vector<3x16xf32>, vector<3x16xf32>, vector<3x16xf32>, vector<3x16xf32>, vector<3x16xf32>, vector<3x16xf32>, vector<3x16xf32>, vector<3x16xf32>, vector<3x16xf32> -> vector<3x256xf32>
    %187 = math.tanh %186 : vector<3x256xf32>
    %c0_201 = arith.constant 0 : index
    %c0_202 = arith.constant 0 : index
    %c0_203 = arith.constant 0 : index
    %188 = vector.load %arg3[%c0_201, %c0_202, %c0_203] : memref<2x3x256xf32, #tpu.memory_space<vmem>>, vector<1x3x256xf32>
    %189 = vector.shape_cast %188 : vector<1x3x256xf32> to vector<3x256xf32>
    %190 = vector.shape_cast %187 : vector<3x256xf32> to vector<1x3x256xf32>
    tpu.vector_store %arg3[%c0_201, %c0_202, %c0_203], %190 {strides = array<i32>} : memref<2x3x256xf32, #tpu.memory_space<vmem>>, vector<1x3x256xf32>,
    %191 = vector.extract_strided_slice %169 {offsets = [0, 384], sizes = [3, 16], strides = [1, 1]} : vector<3x768xf32> to vector<3x16xf32>
    %192 = vector.extract_strided_slice %169 {offsets = [0, 402], sizes = [3, 16], strides = [1, 1]} : vector<3x768xf32> to vector<3x16xf32>
    %193 = vector.extract_strided_slice %169 {offsets = [0, 420], sizes = [3, 16], strides = [1, 1]} : vector<3x768xf32> to vector<3x16xf32>
    %194 = vector.extract_strided_slice %169 {offsets = [0, 438], sizes = [3, 16], strides = [1, 1]} : vector<3x768xf32> to vector<3x16xf32>
    %195 = vector.extract_strided_slice %169 {offsets = [0, 456], sizes = [3, 16], strides = [1, 1]} : vector<3x768xf32> to vector<3x16xf32>
    %196 = vector.extract_strided_slice %169 {offsets = [0, 474], sizes = [3, 16], strides = [1, 1]} : vector<3x768xf32> to vector<3x16xf32>
    %197 = vector.extract_strided_slice %169 {offsets = [0, 492], sizes = [3, 16], strides = [1, 1]} : vector<3x768xf32> to vector<3x16xf32>
    %198 = vector.extract_strided_slice %169 {offsets = [0, 510], sizes = [3, 16], strides = [1, 1]} : vector<3x768xf32> to vector<3x16xf32>
    %199 = vector.extract_strided_slice %169 {offsets = [0, 528], sizes = [3, 16], strides = [1, 1]} : vector<3x768xf32> to vector<3x16xf32>
    %200 = vector.extract_strided_slice %169 {offsets = [0, 546], sizes = [3, 16], strides = [1, 1]} : vector<3x768xf32> to vector<3x16xf32>
    %201 = vector.extract_strided_slice %169 {offsets = [0, 564], sizes = [3, 16], strides = [1, 1]} : vector<3x768xf32> to vector<3x16xf32>
    %202 = vector.extract_strided_slice %169 {offsets = [0, 582], sizes = [3, 16], strides = [1, 1]} : vector<3x768xf32> to vector<3x16xf32>
    %203 = vector.extract_strided_slice %169 {offsets = [0, 600], sizes = [3, 16], strides = [1, 1]} : vector<3x768xf32> to vector<3x16xf32>
    %204 = vector.extract_strided_slice %169 {offsets = [0, 618], sizes = [3, 16], strides = [1, 1]} : vector<3x768xf32> to vector<3x16xf32>
    %205 = vector.extract_strided_slice %169 {offsets = [0, 636], sizes = [3, 16], strides = [1, 1]} : vector<3x768xf32> to vector<3x16xf32>
    %206 = vector.extract_strided_slice %169 {offsets = [0, 654], sizes = [3, 16], strides = [1, 1]} : vector<3x768xf32> to vector<3x16xf32>
    %207 = tpu.concatenate %191, %192, %193, %194, %195, %196, %197, %198, %199, %200, %201, %202, %203, %204, %205, %206 in 1 : vector<3x16xf32>, vector<3x16xf32>, vector<3x16xf32>, vector<3x16xf32>, vector<3x16xf32>, vector<3x16xf32>, vector<3x16xf32>, vector<3x16xf32>, vector<3x16xf32>, vector<3x16xf32>, vector<3x16xf32>, vector<3x16xf32>, vector<3x16xf32>, vector<3x16xf32>, vector<3x16xf32>, vector<3x16xf32> -> vector<3x256xf32>
    %208 = math.tanh %207 : vector<3x256xf32>
    %c1_204 = arith.constant 1 : index
    %c0_205 = arith.constant 0 : index
    %c0_206 = arith.constant 0 : index
    %209 = vector.load %arg3[%c1_204, %c0_205, %c0_206] : memref<2x3x256xf32, #tpu.memory_space<vmem>>, vector<1x3x256xf32>
    %210 = vector.shape_cast %209 : vector<1x3x256xf32> to vector<3x256xf32>
    %211 = vector.shape_cast %208 : vector<3x256xf32> to vector<1x3x256xf32>
    tpu.vector_store %arg3[%c1_204, %c0_205, %c0_206], %211 {strides = array<i32>} : memref<2x3x256xf32, #tpu.memory_space<vmem>>, vector<1x3x256xf32>,
    return
  }
  func.func @transform_0(%arg0: i32) -> (i32, i32, i32) {
    %c0_i32 = arith.constant 0 : i32
    %c0_i32_0 = arith.constant 0 : i32
    %c0_i32_1 = arith.constant 0 : i32
    %c0_i32_2 = arith.constant 0 : i32
    return %c0_i32, %c0_i32_0, %c0_i32_1 : i32, i32, i32
  }
  func.func @transform_1(%arg0: i32) -> (i32, i32) {
    %c0_i32 = arith.constant 0 : i32
    %c0_i32_0 = arith.constant 0 : i32
    %c0_i32_1 = arith.constant 0 : i32
    return %c0_i32, %c0_i32_0 : i32, i32
  }
  func.func @transform_2(%arg0: i32) -> (i32, i32, i32) {
    %c0_i32 = arith.constant 0 : i32
    %c0_i32_0 = arith.constant 0 : i32
    %c0_i32_1 = arith.constant 0 : i32
    %c0_i32_2 = arith.constant 0 : i32
    return %c0_i32, %c0_i32_0, %c0_i32_1 : i32, i32, i32
  }
}

</mosaic_0001>

<bundles_post_ra>
// kernel: output_block_forward.1
= control target key start
LH: loop header
LB: loop body
LE: loop exit
PB: predicated region body
PF: predicated region fallthrough
CT: control target
= control target key end

     0   :  { %v1288_v1 = vmov 0.0   ;;  %s1289_s11 = smov 115   ;;  %s1290_s12 = smov 113   ;;  %vm25_vm0 = vcmask 134152   ;;  %vm34_vm1 = vcmask 3072   ;;  %vm43_vm2 = vcmask 142472   ;;  %s1822_s0 = inlined_call_operand.vmem [shape: f32[2,4,256], index: 0, kind: input, shape index: {}]   ;;  %s1823_s1 = inlined_call_operand.vmem [shape: f32[3,40], index: 1, kind: input, shape index: {}]   ;;  %s1824_s2 = inlined_call_operand.vmem [shape: f32[2,3,256], index: 2, kind: output, shape index: {}]  }
   0x1   :  { %v1351_v0 = vld [vmem:[%s1822_s0] sm:$0xff]  ;;  %13 = vst [vmem:[#allocation2] sm:$0xff] %v1288_v1  ;;  %14 = vst [vmem:[#allocation2 + $0x8] sm:$0xff] %v1288_v1  ;;  %887 = vmatprep.mubr.f32.mxu0 %v1288_v1  ;;  %958 = vmatprep.mubr.f32.mxu1 %v1288_v1  ;;  %s1291_s13 = smov 19   ;;  %s1292_s14 = smov 111   ;;  %v12_v2 = vld [vmem:[%s1822_s0 + $0x8] sm:$0xff] }
   0x2   :  { %15 = vst [vmem:[#allocation2 + $0x10] sm:$0xff] %v1288_v1  ;;  %16 = vst [vmem:[#allocation2 + $0x18] sm:$0xff] %v1288_v1  ;;  %37 = vrot.lane.b32.xlu1 %v1351_v0, %s1289_s11  ;;  %19 = vrot.lane.b32.xlu0 %v1351_v0, %s1290_s12  ;;  %s1293_s15 = smov 21   ;;  %s1294_s16 = smov 17   ;;  %vm52_vm3 = vcmask 281752   ;;  %vm61_vm4 = vcmask 150672  }
   0x3   :  { %389 = vst [vmem:[#allocation3 + $0xc0] sm:$0xf0] %v1288_v1  ;;  %390 = vst [vmem:[#allocation3 + $0xc8] sm:$0xf0] %v1288_v1  ;;  %s1295_s19 = smov 23   ;;  %s1296_s20 = smov 25  }
   0x4   :  { %391 = vst [vmem:[#allocation3 + $0xd0] sm:$0xf0] %v1288_v1  ;;  %392 = vst [vmem:[#allocation3 + $0xd8] sm:$0xf0] %v1288_v1  ;;  %s1297_s21 = smov 27   ;;  %s1298_s22 = smov 29  }
   0x5   :  { %393 = vst [vmem:[#allocation3 + $0xe0] sm:$0xf0] %v1288_v1  ;;  %394 = vst [vmem:[#allocation3 + $0xe8] sm:$0xf0] %v1288_v1  ;;  %s1299_s23 = smov 31   ;;  %s1300_s0 = smov 33  }
   0x6   :  { %46 = vrot.lane.b32.xlu1 %v1351_v0, %s1291_s13  ;;  %28 = vrot.lane.b32.xlu0 %v1351_v0, %s1292_s14  ;;  %s1301_s24 = smov 35   ;;  %s1302_s25 = smov 37   ;;  %vm70_vm5 = vcmask 290072   ;;  %vm73_vm6 = vcmask 429352   ;;  %vm76_vm7 = vcmask 298272   ;;  %vm85_vm8 = vcmask 437672  }
   0x7   :  { %s1303_s26 = smov 39   ;;  %s1304_s27 = smov 41   ;;  %vm88_vm9 = vcmask 576952   ;;  %vm91_vm10 = vcmask 445872   ;;  %vm100_vm11 = vcmask 585272   ;;  %vm1825_vm12 = vcmask 724552  }
   0x8   :  { %s1305_s28 = smov 43   ;;  %s1306_s29 = smov 45   ;;  %vm1826_vm13 = vcmask 593472   ;;  %vm115_vm14 = vcmask 732872   ;;  %vm1827_vm15 = vcmask 872152  }
   0x9   :  { %s1307_s30 = smov 47   ;;  %s1308_s3 = smov 49  }
   0xa   :  { %64 = vrot.lane.b32.xlu1 %v1351_v0, %s1293_s15  ;;  %55 = vrot.lane.b32.xlu0 %v1351_v0, %s1294_s16  ;;  %s1309_s4 = smov 51   ;;  %s1310_s5 = smov 83  }
   0xb   :  { %s1311_s6 = smov 81   ;;  %s1312_s7 = smov 85  }
   0xc   :  { %s1313_s8 = smov 126   ;;  %s1314_s9 = smov 127  }
   0xd   :  { %s1315_s10 = smov 108   ;;  %s1322_s18 = smov 100  }
   0xe   :  { %21 = vrot.lane.b32.xlu1 %v12_v2, %s1290_s12  ;;  %79 = vrot.lane.b32.xlu0 %v1351_v0, %s1295_s19  ;;  %s1317_s12 = smov 91  }
  0x12   :  { %94 = vrot.lane.b32.xlu1 %v1351_v0, %s1296_s20  ;;  %30 = vrot.lane.b32.xlu0 %v12_v2, %s1292_s14  ;;  %s1319_s14 = smov 92  }
  0x16   :  { %48 = vrot.lane.b32.xlu1 %v12_v2, %s1291_s13  ;;  %39 = vrot.lane.b32.xlu0 %v12_v2, %s1289_s11  ;;  %s1316_s11 = smov 110   ;;  %s1318_s13 = smov 109  }
  0x1a   :  { %109 = vrot.lane.b32.xlu1 %v1351_v0, %s1297_s21  ;;  %57 = vrot.lane.b32.xlu0 %v12_v2, %s1294_s16 }
  0x1e   :  { %124 = vrot.lane.b32.xlu1 %v1351_v0, %s1298_s22  ;;  %66 = vrot.lane.b32.xlu0 %v12_v2, %s1293_s15  ;;  %s1320_s15 = smov 90  }
  0x22   :  { %139 = vrot.lane.b32.xlu1 %v1351_v0, %s1299_s23  ;;  %81 = vrot.lane.b32.xlu0 %v12_v2, %s1295_s19  ;;  %s1323_s19 = smov 122  }
  0x26   :  { %163 = vrot.lane.b32.xlu1 %v1351_v0, %s1300_s0  ;;  %96 = vrot.lane.b32.xlu0 %v12_v2, %s1296_s20  ;;  %s1324_s20 = smov 114  }
  0x2a   :  { %111 = vrot.lane.b32.xlu1 %v12_v2, %s1297_s21  ;;  %178 = vrot.lane.b32.xlu0 %v1351_v0, %s1301_s24  ;;  %s1325_s21 = smov 116  }
  0x2e   :  { %126 = vrot.lane.b32.xlu1 %v12_v2, %s1298_s22  ;;  %207 = vrot.lane.b32.xlu0 %v1351_v0, %s1302_s25  ;;  %s1326_s22 = smov 120  }
  0x32   :  { %227 = vrot.lane.b32.xlu1 %v1351_v0, %s1303_s26  ;;  %141 = vrot.lane.b32.xlu0 %v12_v2, %s1299_s23  ;;  %s1327_s23 = smov 112  }
  0x36   :  { %165 = vrot.lane.b32.xlu1 %v12_v2, %s1300_s0  ;;  %247 = vrot.lane.b32.xlu0 %v1351_v0, %s1304_s27  ;;  %s1328_s0 = smov 118  }
  0x3a   :  { %267 = vrot.lane.b32.xlu1 %v1351_v0, %s1305_s28  ;;  %180 = vrot.lane.b32.xlu0 %v12_v2, %s1301_s24  ;;  %s1329_s24 = smov 106  }
  0x3e   :  { %287 = vrot.lane.b32.xlu1 %v1351_v0, %s1306_s29  ;;  %209 = vrot.lane.b32.xlu0 %v12_v2, %s1302_s25  ;;  %s1330_s25 = smov 104  }
  0x42   :  { %229 = vrot.lane.b32.xlu0 %v12_v2, %s1303_s26  ;;  %309 = vrot.lane.b32.xlu1 %v1351_v0, %s1307_s30  ;;  %s1331_s26 = smov 102  }
  0x46   :  { %249 = vrot.lane.b32.xlu0 %v12_v2, %s1304_s27  ;;  %328 = vrot.lane.b32.xlu1 %v1351_v0, %s1308_s3  ;;  %s1332_s27 = smov 98  }
  0x4a   :  { %269 = vrot.lane.b32.xlu0 %v12_v2, %s1305_s28  ;;  %345 = vrot.lane.b32.xlu1 %v1351_v0, %s1309_s4 }
  0x4e   :  { %289 = vrot.lane.b32.xlu0 %v12_v2, %s1306_s29  ;;  %356 = vrot.lane.b32.xlu1 %v1351_v0, %s1310_s5 }
  0x52   :  { %367 = vrot.lane.b32.xlu0 %v1351_v0, %s1311_s6  ;;  %378 = vrot.lane.b32.xlu1 %v1351_v0, %s1312_s7 }
  0x56   :  { %311 = vrot.lane.b32.xlu0 %v12_v2, %s1307_s30  ;;  %330 = vrot.lane.b32.xlu1 %v12_v2, %s1308_s3 }
  0x5a   :  { %347 = vrot.lane.b32.xlu0 %v12_v2, %s1309_s4  ;;  %358 = vrot.lane.b32.xlu1 %v12_v2, %s1310_s5 }
  0x5e   :  { %369 = vrot.lane.b32.xlu0 %v12_v2, %s1311_s6  ;;  %380 = vrot.lane.b32.xlu1 %v12_v2, %s1312_s7 }
  0x74   :  { %v38_v3 = vpop.permute.xlu1 %37  ;;  %v20_v4 = vpop.permute.xlu0 %19 }
  0x75   :  { %26 = vst.msk [vmem:[#allocation2] sm:$0xf] %vm25_vm0, %v20_v4 }
  0x78   :  { %v47_v5 = vpop.permute.xlu1 %46  ;;  %v29_v6 = vpop.permute.xlu0 %28 }
  0x79   :  { %35 = vst.msk [vmem:[#allocation2] sm:$0xf] %vm34_vm1, %v29_v6 }
  0x7a   :  { %44 = vst.msk [vmem:[#allocation2] sm:$0xf] %vm43_vm2, %v38_v3 }
  0x7b   :  { %53 = vst.msk [vmem:[#allocation2] sm:$0xf] %vm52_vm3, %v47_v5 }
  0x7c   :  { %v65_v7 = vpop.permute.xlu1 %64  ;;  %v56_v8 = vpop.permute.xlu0 %55 }
  0x7d   :  { %62 = vst.msk [vmem:[#allocation2] sm:$0xf] %vm61_vm4, %v56_v8 }
  0x7e   :  { %71 = vst.msk [vmem:[#allocation2] sm:$0xf] %vm70_vm5, %v65_v7 }
  0x7f   :  { %74 = vst.msk [vmem:[#allocation2] sm:$0xf] %vm73_vm6, %v65_v7 }
  0x80   :  { %v22_v9 = vpop.permute.xlu1 %21  ;;  %77 = vst.msk [vmem:[#allocation2] sm:$0xf] %vm76_vm7, %v47_v5  ;;  %v80_v10 = vpop.permute.xlu0 %79 }
  0x81   :  { %27 = vst.msk [vmem:[#allocation2 + $0x10] sm:$0xf] %vm25_vm0, %v22_v9  ;;  %vm121_vm0 = vcmask 741072  }
  0x82   :  { %86 = vst.msk [vmem:[#allocation2] sm:$0xf] %vm85_vm8, %v80_v10 }
  0x83   :  { %89 = vst.msk [vmem:[#allocation2] sm:$0xf] %vm88_vm9, %v80_v10 }
  0x84   :  { %92 = vst.msk [vmem:[#allocation2] sm:$0xf] %vm91_vm10, %v65_v7  ;;  %v95_v11 = vpop.permute.xlu1 %94  ;;  %v31_v12 = vpop.permute.xlu0 %30 }
  0x85   :  { %101 = vst.msk [vmem:[#allocation2] sm:$0xf] %vm100_vm11, %v95_v11 }
  0x86   :  { %36 = vst.msk [vmem:[#allocation2 + $0x10] sm:$0xf] %vm34_vm1, %v31_v12  ;;  %vm130_vm1 = vcmask 880472  }
  0x87   :  { %104 = vst.msk [vmem:[#allocation2] sm:$0xf] %vm1825_vm12, %v95_v11  ;;  %vm1828_vm12 = vcmask 1019752  }
  0x88   :  { %107 = vst.msk [vmem:[#allocation2] sm:$0xf] %vm1826_vm13, %v80_v10  ;;  %v49_v13 = vpop.permute.xlu1 %48  ;;  %v40_v14 = vpop.permute.xlu0 %39  ;;  %vm136_vm13 = vcmask 888672  }
  0x89   :  { %45 = vst.msk [vmem:[#allocation2 + $0x10] sm:$0xf] %vm43_vm2, %v40_v14  ;;  %vm1829_vm2 = vcmask 1028072  }
  0x8a   :  { %54 = vst.msk [vmem:[#allocation2 + $0x10] sm:$0xf] %vm52_vm3, %v49_v13  ;;  %vm155_vm3 = vcmask 1044472  }
  0x8c   :  { %v110_v15 = vpop.permute.xlu1 %109  ;;  %v58_v16 = vpop.permute.xlu0 %57 }
  0x8d   :  { %116 = vst.msk [vmem:[#allocation2] sm:$0xf] %vm115_vm14, %v110_v15 }
  0x8e   :  { %63 = vst.msk [vmem:[#allocation2 + $0x10] sm:$0xf] %vm61_vm4, %v58_v16  ;;  %vm156_vm4 = vcmask 121860  }
  0x8f   :  { %119 = vst.msk [vmem:[#allocation2] sm:$0xf] %vm1827_vm15, %v110_v15  ;;  %vm150_vm15 = vcmask 252928  }
  0x90   :  { %122 = vst.msk [vmem:[#allocation2] sm:$0xf] %vm121_vm0, %v95_v11  ;;  %v125_v17 = vpop.permute.xlu1 %124  ;;  %v67_v18 = vpop.permute.xlu0 %66 }
  0x91   :  { %131 = vst.msk [vmem:[#allocation2] sm:$0xf] %vm130_vm1, %v125_v17 }
  0x92   :  { %72 = vst.msk [vmem:[#allocation2 + $0x10] sm:$0xf] %vm70_vm5, %v67_v18  ;;  %vm1422_vm5 = vmor %vm156_vm4, %vm155_vm3  ;;  %vm1849_vm3 = vcmask 593472   ;;  %vm189_vm4 = vcmask 285696  }
  0x93   :  { %134 = vst.msk [vmem:[#allocation2] sm:$0xf] %vm1828_vm12, %v125_v17  ;;  %vm169_vm12 = vcmask 126072  }
  0x94   :  { %75 = vst.msk [vmem:[#allocation2 + $0x10] sm:$0xf] %vm73_vm6, %v67_v18  ;;  %v140_v19 = vpop.permute.xlu1 %139  ;;  %v82_v20 = vpop.permute.xlu0 %81  ;;  %vm1830_vm6 = vcmask 1036272  }
  0x95   :  { %137 = vst.msk [vmem:[#allocation2] sm:$0xf] %vm136_vm13, %v110_v15  ;;  %v148_v21 = vrot.slane %v140_v19, 4 }
  0x96   :  { %78 = vst.msk [vmem:[#allocation2 + $0x10] sm:$0xf] %vm76_vm7, %v49_v13  ;;  %vm172_vm7 = vcmask 265352  }
  0x97   :  { %146 = vst.msk [vmem:[#allocation2] sm:$0xf] %vm1829_vm2, %v140_v19  ;;  %v151_v23 = vsel %vm150_vm15, %v148_v21, %v140_v19  ;;  %vm175_vm2 = vcmask 134272  }
  0x98   :  { %87 = vst.msk [vmem:[#allocation2 + $0x10] sm:$0xf] %vm85_vm8, %v82_v20  ;;  %v164_v24 = vpop.permute.xlu1 %163  ;;  %v97_v25 = vpop.permute.xlu0 %96  ;;  %vm1848_vm8 = vcmask 724552  }
  0x99   :  { %90 = vst.msk [vmem:[#allocation2 + $0x10] sm:$0xf] %vm88_vm9, %v82_v20  ;;  %v197_v26 = vrot.slane %v164_v24, 4  ;;  %vm1831_vm9 = vcmask 273672  }
  0x9a   :  { %93 = vst.msk [vmem:[#allocation2 + $0x10] sm:$0xf] %vm91_vm10, %v67_v18  ;;  %vm1832_vm10 = vcmask 269312  }
  0x9b   :  { %158 = vst.msk [vmem:[#allocation2] sm:$0xff] %vm1422_vm5, %v151_v23  ;;  %v200_v30 = vsel %vm1832_vm10, %v164_v24, %v197_v26  ;;  %vm221_vm10 = vcmask 560552  }
  0x9c   :  { %161 = vst.msk [vmem:[#allocation2] sm:$0xf] %vm1830_vm6, %v125_v17  ;;  %v112_v27 = vpop.permute.xlu1 %111  ;;  %v179_v28 = vpop.permute.xlu0 %178  ;;  %vm1834_vm6 = vcmask 412952  }
  0x9d   :  { %170 = vst.msk [vmem:[#allocation2 + $0x4] sm:$0xf] %vm169_vm12, %v164_v24  ;;  %v187_v29 = vrot.slane %v179_v28, 4 }
  0x9e   :  { %102 = vst.msk [vmem:[#allocation2 + $0x10] sm:$0xf] %vm100_vm11, %v97_v25  ;;  %vm1850_vm11 = vcmask 872152  }
  0x9f   :  { %173 = vst.msk [vmem:[#allocation2 + $0x4] sm:$0xf] %vm172_vm7, %v164_v24  ;;  %v190_v31 = vsel %vm189_vm4, %v179_v28, %v187_v29 }
  0xa0   :  { %105 = vst.msk [vmem:[#allocation2 + $0x10] sm:$0xf] %vm1848_vm8, %v97_v25  ;;  %vm1833_vm8 = vcmask 281872   ;;  %v127_v32 = vpop.permute.xlu1 %126  ;;  %v208_v33 = vpop.permute.xlu0 %207 }
  0xa1   :  { %108 = vst.msk [vmem:[#allocation2 + $0x10] sm:$0xf] %vm1849_vm3, %v82_v20  ;;  %vm213_vm3 = vcmask 302080   ;;  %v211_v34 = vrot.slane %v208_v33, 4 }
  0xa2   :  { %176 = vst.msk [vmem:[#allocation2 + $0x4] sm:$0xf] %vm175_vm2, %v140_v19 }
  0xa3   :  { %117 = vst.msk [vmem:[#allocation2 + $0x10] sm:$0xf] %vm115_vm14, %v112_v27  ;;  %vm218_vm14 = vcmask 421272   ;;  %v214_v35 = vsel %vm213_vm3, %v208_v33, %v211_v34 }
  0xa4   :  { %185 = vst.msk [vmem:[#allocation2 + $0x4] sm:$0xf] %vm1831_vm9, %v179_v28  ;;  %vm1851_vm9 = vcmask 1019752   ;;  %v228_v36 = vpop.permute.xlu1 %227  ;;  %v142_v37 = vpop.permute.xlu0 %141 }
  0xa5   :  { %120 = vst.msk [vmem:[#allocation2 + $0x10] sm:$0xf] %vm1850_vm11, %v112_v27  ;;  %vm233_vm11 = vcmask 318464   ;;  %v231_v38 = vrot.slane %v228_v36, 4  ;;  %v149_v39 = vrot.slane %v142_v37, 4 }
  0xa6   :  { %123 = vst.msk [vmem:[#allocation2 + $0x10] sm:$0xf] %vm121_vm0, %v97_v25  ;;  %vm1835_vm0 = vcmask 429472  }
  0xa7   :  { %195 = vst.msk [vmem:[#allocation2 + $0x4] sm:$0xf] %vm1834_vm6, %v190_v31  ;;  %vm1836_vm6 = vcmask 708152   ;;  %v234_v40 = vsel %vm233_vm11, %v228_v36, %v231_v38  ;;  %v152_v41 = vsel %vm150_vm15, %v149_v39, %v142_v37  ;;  %vm1840_vm15 = vcmask 855752  }
  0xa8   :  { %132 = vst.msk [vmem:[#allocation2 + $0x10] sm:$0xf] %vm130_vm1, %v127_v32  ;;  %vm1841_vm1 = vcmask 568872   ;;  %v166_v42 = vpop.permute.xlu1 %165  ;;  %v248_v43 = vpop.permute.xlu0 %247 }
  0xa9   :  { %205 = vst.msk [vmem:[#allocation2 + $0x4] sm:$0xf] %vm1833_vm8, %v200_v30  ;;  %vm1852_vm8 = vcmask 1028072   ;;  %v251_v44 = vrot.slane %v248_v43, 4  ;;  %v198_v45 = vrot.slane %v166_v42, 4 }
  0xaa   :  { %135 = vst.msk [vmem:[#allocation2 + $0x10] sm:$0xf] %vm1851_vm9, %v127_v32  ;;  %vm1839_vm9 = vcmask 334848  }
  0xab   :  { %138 = vst.msk [vmem:[#allocation2 + $0x10] sm:$0xf] %vm136_vm13, %v112_v27  ;;  %vm1837_vm13 = vcmask 577072   ;;  %v254_v46 = vsel %vm1839_vm9, %v248_v43, %v251_v44  ;;  %vm302_vm9 = vcmask 105476  }
  0xac   :  { %219 = vst.msk [vmem:[#allocation2 + $0x4] sm:$0xf] %vm218_vm14, %v214_v35  ;;  %v268_v47 = vpop.permute.xlu1 %267  ;;  %v181_v48 = vpop.permute.xlu0 %180 }
  0xad   :  { %222 = vst.msk [vmem:[#allocation2 + $0x4] sm:$0xf] %vm221_vm10, %v214_v35  ;;  %v271_v49 = vrot.slane %v268_v47, 4  ;;  %v188_v50 = vrot.slane %v181_v48, 4 }
  0xae   :  { %147 = vst.msk [vmem:[#allocation2 + $0x10] sm:$0xf] %vm1852_vm8, %v142_v37  ;;  %vm1853_vm8 = vcmask 1036272  }
  0xaf   :  { %225 = vst.msk [vmem:[#allocation2 + $0x4] sm:$0xf] %vm1835_vm0, %v190_v31  ;;  %vm1838_vm0 = vcmask 716472   ;;  %v191_v53 = vsel %vm189_vm4, %v181_v48, %v188_v50  ;;  %vm1844_vm4 = vcmask 1019872  }
  0xb0   :  { %239 = vst.msk [vmem:[#allocation2 + $0x4] sm:$0xf] %vm1841_vm1, %v234_v40  ;;  %vm293_vm1 = vcmask 367616   ;;  %v288_v54 = vpop.permute.xlu1 %287  ;;  %v210_v55 = vpop.permute.xlu0 %209 }
  0xb1   :  { %159 = vst.msk [vmem:[#allocation2 + $0x10] sm:$0xff] %vm1422_vm5, %v152_v41  ;;  %vm1842_vm5 = vcmask 724672   ;;  %v291_v56 = vrot.slane %v288_v54, 4  ;;  %v212_v57 = vrot.slane %v210_v55, 4 }
  0xb2   :  { %242 = vst.msk [vmem:[#allocation2 + $0x4] sm:$0xf] %vm1836_vm6, %v234_v40  ;;  %vm273_vm6 = vcmask 351232  }
  0xb3   :  { %162 = vst.msk [vmem:[#allocation2 + $0x10] sm:$0xf] %vm1853_vm8, %v127_v32  ;;  %vm1854_vm8 = vcmask 273672   ;;  %v274_v52 = vsel %vm273_vm6, %v268_v47, %v271_v49  ;;  %v294_v59 = vsel %vm293_vm1, %v288_v54, %v291_v56  ;;  %v215_v60 = vsel %vm213_vm3, %v210_v55, %v212_v57 }
  0xb4   :  { %171 = vst.msk [vmem:[#allocation2 + $0x14] sm:$0xf] %vm169_vm12, %v166_v42  ;;  %vm278_vm12 = vcmask 864072   ;;  %v230_v61 = vpop.permute.xlu0 %229  ;;  %v310_v62 = vpop.permute.xlu1 %309  ;;  %vm325_vm3 = vcmask 117872  }
  0xb5   :  { %174 = vst.msk [vmem:[#allocation2 + $0x14] sm:$0xf] %vm172_vm7, %v166_v42  ;;  %vm1855_vm7 = vcmask 269312   ;;  %v232_v63 = vrot.slane %v230_v61, 4  ;;  %v313_v0 = vrot.slane %v310_v62, 4 }
  0xb6   :  { %245 = vst.msk [vmem:[#allocation2 + $0x4] sm:$0xf] %vm1837_vm13, %v214_v35  ;;  %v201_v51 = vsel %vm1855_vm7, %v166_v42, %v198_v45  ;;  %vm281_vm13 = vcmask 1003352   ;;  %vm1843_vm7 = vcmask 1011672  }
  0xb7   :  { %177 = vst.msk [vmem:[#allocation2 + $0x14] sm:$0xf] %vm175_vm2, %v142_v37  ;;  %vm284_vm2 = vcmask 872272   ;;  %v235_v2 = vsel %vm233_vm11, %v230_v61, %v232_v63  ;;  %vm1864_vm11 = vcmask 334848  }
  0xb8   :  { %259 = vst.msk [vmem:[#allocation2 + $0x4] sm:$0xf] %vm1838_vm0, %v254_v46  ;;  %vm301_vm0 = vcmask 1044456   ;;  %v250_v3 = vpop.permute.xlu0 %249  ;;  %v329_v4 = vpop.permute.xlu1 %328 }
  0xb9   :  { %262 = vst.msk [vmem:[#allocation2 + $0x4] sm:$0xf] %vm1840_vm15, %v254_v46  ;;  %vm1856_vm15 = vcmask 412952   ;;  %v252_v5 = vrot.slane %v250_v3, 4  ;;  %v332_v6 = vrot.slane %v329_v4, 4 }
  0xba   :  { %186 = vst.msk [vmem:[#allocation2 + $0x14] sm:$0xf] %vm1854_vm8, %v181_v48  ;;  %vm1857_vm8 = vcmask 281872  }
  0xbb   :  { %265 = vst.msk [vmem:[#allocation2 + $0x4] sm:$0xf] %vm1842_vm5, %v234_v40  ;;  %vm1477_vm5 = vmor %vm302_vm9, %vm301_vm0  ;;  %vm1845_vm0 = vcmask 248952   ;;  %vm1860_vm9 = vcmask 429472   ;;  %v255_v7 = vsel %vm1864_vm11, %v250_v3, %v252_v5  ;;  %vm364_vm11 = vcmask 544152  }
  0xbc   :  { %279 = vst.msk [vmem:[#allocation2 + $0x4] sm:$0xf] %vm278_vm12, %v274_v52  ;;  %v270_v8 = vpop.permute.xlu0 %269  ;;  %v346_v9 = vpop.permute.xlu1 %345 }
  0xbd   :  { %196 = vst.msk [vmem:[#allocation2 + $0x14] sm:$0xf] %vm1856_vm15, %v191_v53  ;;  %vm317_vm15 = vcmask 109672   ;;  %v272_v10 = vrot.slane %v270_v8, 4  ;;  %v349_v12 = vrot.slane %v346_v9, 4 }
  0xbe   :  { %282 = vst.msk [vmem:[#allocation2 + $0x4] sm:$0xf] %vm281_vm13, %v274_v52 }
  0xbf   :  { %206 = vst.msk [vmem:[#allocation2 + $0x14] sm:$0xf] %vm1857_vm8, %v201_v51  ;;  %vm336_vm8 = vcmask 257272   ;;  %v275_v14 = vsel %vm273_vm6, %v270_v8, %v272_v10  ;;  %vm1868_vm6 = vcmask 1011672  }
  0xc0   :  { %285 = vst.msk [vmem:[#allocation2 + $0x4] sm:$0xf] %vm284_vm2, %v254_v46  ;;  %v290_v15 = vpop.permute.xlu0 %289  ;;  %v357_v16 = vpop.permute.xlu1 %356 }
  0xc1   :  { %299 = vst.msk [vmem:[#allocation2 + $0x4] sm:$0xf] %vm1843_vm7, %v294_v59  ;;  %vm339_vm7 = vcmask 396552   ;;  %v292_v17 = vrot.slane %v290_v15, 4  ;;  %v360_v18 = vrot.slane %v357_v16, 4 }
  0xc2   :  { %220 = vst.msk [vmem:[#allocation2 + $0x14] sm:$0xf] %vm218_vm14, %v215_v60  ;;  %vm1861_vm14 = vcmask 568872  }
  0xc3   :  { %304 = vst.msk [vmem:[#allocation2 + $0x4] sm:$0xff] %vm1477_vm5, %v294_v59  ;;  %v295_v19 = vsel %vm293_vm1, %v290_v15, %v292_v17  ;;  %vm1870_vm1 = vcmask 248952  }
  0xc4   :  { %223 = vst.msk [vmem:[#allocation2 + $0x14] sm:$0xf] %vm221_vm10, %v215_v60  ;;  %vm1862_vm10 = vcmask 708152   ;;  %v368_v20 = vpop.permute.xlu0 %367  ;;  %v379_v21 = vpop.permute.xlu1 %378 }
  0xc5   :  { %307 = vst.msk [vmem:[#allocation2 + $0x4] sm:$0xf] %vm1844_vm4, %v274_v52  ;;  %vm342_vm4 = vcmask 265472   ;;  %v371_v22 = vrot.slane %v368_v20, 4  ;;  %v382_v23 = vrot.slane %v379_v21, 4 }
  0xc6   :  { %226 = vst.msk [vmem:[#allocation2 + $0x14] sm:$0xf] %vm1860_vm9, %v191_v53  ;;  %vm1863_vm9 = vcmask 577072  }
  0xc7   :  { %318 = vst.msk [vmem:[#allocation2 + $0x8] sm:$0xf] %vm317_vm15, %v313_v0 }
  0xc8   :  { %240 = vst.msk [vmem:[#allocation2 + $0x14] sm:$0xf] %vm1861_vm14, %v235_v2  ;;  %vm1865_vm14 = vcmask 716472   ;;  %v312_v24 = vpop.permute.xlu0 %311  ;;  %v331_v25 = vpop.permute.xlu1 %330 }
  0xc9   :  { %321 = vst.msk [vmem:[#allocation2 + $0x8] sm:$0xf] %vm1845_vm0, %v313_v0  ;;  %vm353_vm0 = vcmask 404872   ;;  %v314_v26 = vrot.slane %v312_v24, 4  ;;  %v333_v27 = vrot.slane %v331_v25, 4 }
  0xca   :  { %243 = vst.msk [vmem:[#allocation2 + $0x14] sm:$0xf] %vm1862_vm10, %v235_v2  ;;  %vm1866_vm10 = vcmask 855752  }
  0xcb   :  { %326 = vst.msk [vmem:[#allocation2 + $0x8] sm:$0xf] %vm325_vm3, %v291_v56 }
  0xcc   :  { %246 = vst.msk [vmem:[#allocation2 + $0x14] sm:$0xf] %vm1863_vm9, %v215_v60  ;;  %v1503_v11 = vld [vmem:[#allocation2] sm:$0xff]  ;;  %vm1867_vm9 = vcmask 724672   ;;  %v348_v28 = vpop.permute.xlu0 %347  ;;  %v359_v29 = vpop.permute.xlu1 %358 }
  0xcd   :  { %337 = vst.msk [vmem:[#allocation2 + $0x8] sm:$0xf] %vm336_vm8, %v332_v6  ;;  %433 = vrot.lane.b32.xlu1 %v1503_v11, %s1313_s8  ;;  %v1511_v13 = vcombine.high %v1503_v11, %v1503_v11  ;;  %411 = vrot.lane.b32.xlu0 %v1503_v11, %s1314_s9  ;;  %400 = vst [vmem:[#allocation3] sm:$0xf] %v1503_v11  ;;  %v350_v31 = vrot.slane %v348_v28, 4  ;;  %v361_v33 = vrot.slane %v359_v29, 4 }
  0xce   :  { %260 = vst.msk [vmem:[#allocation2 + $0x14] sm:$0xf] %vm1865_vm14, %v255_v7  ;;  %v407_v40 = vcombine.low %v1503_v11, %v1503_v11  ;;  %vm585_vm14 = vcmask 736256  }
  0xcf   :  { %340 = vst.msk [vmem:[#allocation2 + $0x8] sm:$0xf] %vm339_vm7, %v332_v6  ;;  %401 = vst [vmem:[#allocation3 + $0x8] sm:$0xf] %v1511_v13 }
  0xd0   :  { %263 = vst.msk [vmem:[#allocation2 + $0x14] sm:$0xf] %vm1866_vm10, %v255_v7  ;;  %v370_v35 = vpop.permute.xlu0 %369  ;;  %v381_v36 = vpop.permute.xlu1 %380  ;;  %vm819_vm10 = vcmask 326656  }
  0xd1   :  { %343 = vst.msk [vmem:[#allocation2 + $0x8] sm:$0xf] %vm342_vm4, %v313_v0  ;;  %507 = vrot.lane.b32.xlu1 %v1503_v11, %s1315_s10  ;;  %459 = vrot.lane.b32.xlu0 %v1503_v11, %s1316_s11  ;;  %v372_v37 = vrot.slane %v370_v35, 4  ;;  %v383_v38 = vrot.slane %v381_v36, 4 }
  0xd2   :  { %266 = vst.msk [vmem:[#allocation2 + $0x14] sm:$0xf] %vm1867_vm9, %v235_v2  ;;  %vm1092_vm9 = vcmask 130048  }
  0xd3   :  { %354 = vst.msk [vmem:[#allocation2 + $0x8] sm:$0xf] %vm353_vm0, %v349_v12 }
  0xd4   :  { %280 = vst.msk [vmem:[#allocation2 + $0x14] sm:$0xf] %vm278_vm12, %v275_v14  ;;  %vm386_vm12 = vcmask 552472  }
  0xd5   :  { %283 = vst.msk [vmem:[#allocation2 + $0x14] sm:$0xf] %vm281_vm13, %v275_v14  ;;  %vm375_vm13 = vcmask 413072   ;;  %555 = vrot.lane.b32.xlu1 %v1503_v11, %s1317_s12 }
  0xd6   :  { %286 = vst.msk [vmem:[#allocation2 + $0x14] sm:$0xf] %vm284_vm2, %v255_v7  ;;  %vm1869_vm2 = vcmask 1019872  }
  0xd7   :  { %365 = vst.msk [vmem:[#allocation2 + $0x8] sm:$0xf] %vm364_vm11, %v360_v18 }
  0xd8   :  { %300 = vst.msk [vmem:[#allocation2 + $0x14] sm:$0xf] %vm1868_vm6, %v295_v19  ;;  %vm1096_vm6 = vcmask 392192  }
  0xd9   :  { %305 = vst.msk [vmem:[#allocation2 + $0x14] sm:$0xff] %vm1477_vm5, %v295_v19  ;;  %481 = vrot.lane.b32.xlu1 %v1503_v11, %s1318_s13  ;;  %vm489_vm5 = vcmask 891904  }
  0xda   :  { %308 = vst.msk [vmem:[#allocation2 + $0x14] sm:$0xf] %vm1869_vm2, %v275_v14  ;;  %vm1060_vm2 = vcmask 932864  }
  0xdb   :  { %376 = vst.msk [vmem:[#allocation2 + $0x8] sm:$0xf] %vm375_vm13, %v371_v22 }
  0xdc   :  { %387 = vst.msk [vmem:[#allocation2 + $0x8] sm:$0xf] %vm386_vm12, %v382_v23 }
  0xdd   :  { %319 = vst.msk [vmem:[#allocation2 + $0x18] sm:$0xf] %vm317_vm15, %v314_v26  ;;  %529 = vrot.lane.b32.xlu1 %v1503_v11, %s1319_s14  ;;  %vm417_vm15 = vcmask 1039360  }
  0xde   :  { %322 = vst.msk [vmem:[#allocation2 + $0x18] sm:$0xf] %vm1870_vm1, %v314_v26  ;;  %vm1086_vm1 = vcmask 818176  }
  0xdf   :  { %327 = vst.msk [vmem:[#allocation2 + $0x18] sm:$0xf] %vm325_vm3, %v292_v17  ;;  %vm513_vm3 = vcmask 883712  }
  0xe0   :  { %338 = vst.msk [vmem:[#allocation2 + $0x18] sm:$0xf] %vm336_vm8, %v333_v27  ;;  %vm561_vm8 = vcmask 744448  }
  0xe1   :  { %v1540_v30 = vld [vmem:[#allocation2 + $0x10] sm:$0xff]  ;;  %341 = vst.msk [vmem:[#allocation2 + $0x18] sm:$0xf] %vm339_vm7, %v333_v27  ;;  %vm441_vm7 = vcmask 1031168  }
  0xe2   :  { %612 = vrot.lane.b32.xlu0 %v1540_v30, %s1314_s9  ;;  %v1549_v32 = vcombine.high %v1540_v30, %v1540_v30  ;;  %601 = vst [vmem:[#allocation3 + $0x18] sm:$0xf] %v1540_v30  ;;  %344 = vst.msk [vmem:[#allocation2 + $0x18] sm:$0xf] %vm342_vm4, %v314_v26  ;;  %633 = vrot.lane.b32.xlu1 %v1540_v30, %s1313_s8  ;;  %v608_v41 = vcombine.low %v1540_v30, %v1540_v30  ;;  %vm537_vm4 = vcmask 752640  }
  0xe3   :  { %v396_v34 = vld [vmem:[#allocation2 + $0x8] sm:$0xf]  ;;  %355 = vst.msk [vmem:[#allocation2 + $0x18] sm:$0xf] %vm353_vm0, %v350_v31  ;;  %vm465_vm0 = vcmask 900096  }
  0xe4   :  { %602 = vst [vmem:[#allocation3 + $0x20] sm:$0xf] %v1549_v32  ;;  %402 = vst [vmem:[#allocation3 + $0x10] sm:$0xf] %v396_v34  ;;  %v428_v42 = vld [vmem:[#allocation2 + $0x8] sm:$0xff] }
  0xe5   :  { %366 = vst.msk [vmem:[#allocation2 + $0x18] sm:$0xf] %vm364_vm11, %v361_v33  ;;  %v408_v44 = vcombine.low %v428_v42, %v428_v42  ;;  %v432_v45 = vcombine.high %v428_v42, %v428_v42  ;;  %vm1094_vm11 = vcmask 261120  }
  0xe6   :  { %658 = vrot.lane.b32.xlu0 %v1540_v30, %s1316_s11  ;;  %377 = vst.msk [vmem:[#allocation2 + $0x18] sm:$0xf] %vm375_vm13, %v372_v37  ;;  %679 = vrot.lane.b32.xlu1 %v1540_v30, %s1318_s13  ;;  %vm1098_vm13 = vcmask 523264  }
  0xe7   :  { %388 = vst.msk [vmem:[#allocation2 + $0x18] sm:$0xf] %vm386_vm12, %v383_v38  ;;  %vm1100_vm12 = vcmask 654336  }
  0xea   :  { %577 = vrot.lane.b32.xlu0 %v1503_v11, %s1320_s15  ;;  %483 = vrot.lane.b32.xlu1 %v1511_v13, %s1318_s13 }
  0xee   :  { %435 = vrot.lane.b32.xlu0 %v1511_v13, %s1313_s8  ;;  %v597_v39 = vld [vmem:[#allocation2 + $0x18] sm:$0xf]  ;;  %531 = vrot.lane.b32.xlu1 %v1511_v13, %s1319_s14 }
  0xef   :  { %603 = vst [vmem:[#allocation3 + $0x28] sm:$0xf] %v597_v39  ;;  %v605_v43 = vld [vmem:[#allocation2 + $0x18] sm:$0xff] }
  0xf0   :  { %v632_v46 = vcombine.high %v605_v43, %v605_v43  ;;  %v609_v47 = vcombine.low %v605_v43, %v605_v43 }
  0xf2   :  { %409 = vrot.lane.b32.xlu0 %v407_v40, %s1314_s9  ;;  %610 = vrot.lane.b32.xlu1 %v608_v41, %s1314_s9 }
  0xf6   :  { %457 = vrot.lane.b32.xlu0 %v407_v40, %s1316_s11  ;;  %656 = vrot.lane.b32.xlu1 %v608_v41, %s1316_s11 }
  0xfa   :  { %505 = vrot.lane.b32.xlu0 %v407_v40, %s1315_s10  ;;  %702 = vrot.lane.b32.xlu1 %v608_v41, %s1315_s10 }
  0xfe   :  { %553 = vrot.lane.b32.xlu0 %v407_v40, %s1317_s12  ;;  %437 = vrot.lane.b32.xlu1 %v428_v42, %s1313_s8 }
 0x102   :  { %635 = vrot.lane.b32.xlu0 %v1549_v32, %s1313_s8  ;;  %415 = vrot.lane.b32.xlu1 %v428_v42, %s1314_s9 }
 0x106   :  { %579 = vrot.lane.b32.xlu0 %v1511_v13, %s1320_s15  ;;  %463 = vrot.lane.b32.xlu1 %v428_v42, %s1316_s11 }
 0x10a   :  { %681 = vrot.lane.b32.xlu0 %v1549_v32, %s1318_s13  ;;  %581 = vrot.lane.b32.xlu1 %v428_v42, %s1320_s15 }
 0x10e   :  { %485 = vrot.lane.b32.xlu0 %v428_v42, %s1318_s13  ;;  %616 = vrot.lane.b32.xlu1 %v605_v43, %s1314_s9 }
 0x112   :  { %533 = vrot.lane.b32.xlu0 %v428_v42, %s1319_s14  ;;  %662 = vrot.lane.b32.xlu1 %v605_v43, %s1316_s11 }
 0x116   :  { %637 = vrot.lane.b32.xlu0 %v605_v43, %s1313_s8  ;;  %413 = vrot.lane.b32.xlu1 %v408_v44, %s1314_s9 }
 0x11a   :  { %509 = vrot.lane.b32.xlu0 %v408_v44, %s1315_s10  ;;  %461 = vrot.lane.b32.xlu1 %v408_v44, %s1316_s11 }
 0x11e   :  { %557 = vrot.lane.b32.xlu0 %v408_v44, %s1317_s12  ;;  %639 = vrot.lane.b32.xlu1 %v632_v46, %s1313_s8 }
 0x122   :  { %439 = vrot.lane.b32.xlu0 %v432_v45, %s1313_s8  ;;  %725 = vrot.lane.b32.xlu1 %v1540_v30, %s1319_s14 }
 0x126   :  { %614 = vrot.lane.b32.xlu0 %v609_v47, %s1314_s9  ;;  %748 = vrot.lane.b32.xlu1 %v608_v41, %s1317_s12 }
 0x12a   :  { %660 = vrot.lane.b32.xlu0 %v609_v47, %s1316_s11  ;;  %487 = vrot.lane.b32.xlu1 %v432_v45, %s1318_s13 }
 0x12e   :  { %704 = vrot.lane.b32.xlu0 %v1540_v30, %s1315_s10  ;;  %535 = vrot.lane.b32.xlu1 %v432_v45, %s1319_s14 }
 0x132   :  { %727 = vrot.lane.b32.xlu0 %v1549_v32, %s1319_s14  ;;  %683 = vrot.lane.b32.xlu1 %v605_v43, %s1318_s13 }
 0x136   :  { %750 = vrot.lane.b32.xlu0 %v1540_v30, %s1317_s12  ;;  %706 = vrot.lane.b32.xlu1 %v609_v47, %s1315_s10 }
 0x13a   :  { %511 = vrot.lane.b32.xlu0 %v428_v42, %s1315_s10  ;;  %729 = vrot.lane.b32.xlu1 %v605_v43, %s1319_s14 }
 0x13e   :  { %559 = vrot.lane.b32.xlu0 %v428_v42, %s1317_s12  ;;  %752 = vrot.lane.b32.xlu1 %v609_v47, %s1317_s12 }
 0x13f   :  { %v434_v48 = vpop.permute.xlu1 %433  ;;  %v1631_v50 = vpop.permute.xlu0 %411 }
 0x142   :  { %685 = vrot.lane.b32.xlu0 %v632_v46, %s1318_s13  ;;  %771 = vrot.lane.b32.xlu1 %v1540_v30, %s1320_s15 }
 0x143   :  { %v1629_v49 = vpop.permute.xlu1 %507  ;;  %v1639_v52 = vpop.permute.xlu0 %459 }
 0x146   :  { %708 = vrot.lane.b32.xlu0 %v605_v43, %s1315_s10  ;;  %583 = vrot.lane.b32.xlu1 %v432_v45, %s1320_s15 }
 0x147   :  { %v1635_v51 = vpop.permute.xlu1 %555 }
 0x14a   :  { %731 = vrot.lane.b32.xlu0 %v632_v46, %s1319_s14  ;;  %777 = vrot.lane.b32.xlu1 %v632_v46, %s1320_s15 }
 0x14b   :  { %v482_v53 = vpop.permute.xlu1 %481 }
 0x14e   :  { %754 = vrot.lane.b32.xlu0 %v605_v43, %s1317_s12 }
 0x14f   :  { %v530_v54 = vpop.permute.xlu1 %529 }
 0x152   :  { %773 = vrot.lane.b32.xlu0 %v1549_v32, %s1320_s15 }
 0x154   :  { %v1643_v55 = vpop.permute.xlu0 %612  ;;  %v634_v56 = vpop.permute.xlu1 %633 }
 0x156   :  { %775 = vrot.lane.b32.xlu0 %v605_v43, %s1320_s15 }
 0x158   :  { %v1646_v57 = vpop.permute.xlu0 %658  ;;  %v680_v58 = vpop.permute.xlu1 %679 }
 0x15c   :  { %v578_v59 = vpop.permute.xlu0 %577  ;;  %v484_v60 = vpop.permute.xlu1 %483 }
 0x15d   :  { %v490_v62 = vsel %vm489_vm5, %v482_v53, %v484_v60 }
 0x15e   :  { %496 = vst [vmem:[#allocation3 + $0x60] sm:$0xf] %v490_v62 }
 0x160   :  { %v436_v61 = vpop.permute.xlu0 %435  ;;  %v532_v0 = vpop.permute.xlu1 %531 }
 0x161   :  { %v442_v63 = vsel %vm441_vm7, %v434_v48, %v436_v61  ;;  %v538_v3 = vsel %vm537_vm4, %v530_v54, %v532_v0 }
 0x162   :  { %448 = vst [vmem:[#allocation3 + $0x30] sm:$0xf] %v442_v63  ;;  %544 = vst [vmem:[#allocation3 + $0x90] sm:$0xf] %v538_v3 }
 0x164   :  { %v410_v2 = vpop.permute.xlu0 %409  ;;  %v611_v5 = vpop.permute.xlu1 %610 }
 0x165   :  { %v418_v4 = vsel %vm417_vm15, %v410_v2, %v1631_v50  ;;  %v618_v7 = vsel %vm417_vm15, %v611_v5, %v1643_v55 }
 0x166   :  { %424 = vst [vmem:[#allocation3] sm:$0xf0] %v418_v4  ;;  %624 = vst [vmem:[#allocation3 + $0x18] sm:$0xf0] %v618_v7 }
 0x168   :  { %v458_v6 = vpop.permute.xlu0 %457  ;;  %v657_v9 = vpop.permute.xlu1 %656 }
 0x169   :  { %v466_v8 = vsel %vm465_vm0, %v458_v6, %v1639_v52  ;;  %v664_v11 = vsel %vm465_vm0, %v657_v9, %v1646_v57 }
 0x16a   :  { %472 = vst [vmem:[#allocation3 + $0x30] sm:$0xf0] %v466_v8  ;;  %670 = vst [vmem:[#allocation3 + $0x48] sm:$0xf0] %v664_v11 }
 0x16c   :  { %v506_v10 = vpop.permute.xlu0 %505  ;;  %v1661_v13 = vpop.permute.xlu1 %702 }
 0x16d   :  { %v514_v12 = vsel %vm513_vm3, %v506_v10, %v1629_v49  ;;  %v792_v26 = vld [vmem:[#allocation3 + $0x18] sm:$0xff] }
 0x16e   :  { %520 = vst [vmem:[#allocation3 + $0x60] sm:$0xf0] %v514_v12 }
 0x170   :  { %v554_v14 = vpop.permute.xlu0 %553  ;;  %v438_v16 = vpop.permute.xlu1 %437 }
 0x171   :  { %v562_v15 = vsel %vm561_vm8, %v554_v14, %v1635_v51  ;;  %v443_v18 = vsel %vm441_vm7, %v436_v61, %v438_v16 }
 0x172   :  { %568 = vst [vmem:[#allocation3 + $0x90] sm:$0xf0] %v562_v15  ;;  %449 = vst [vmem:[#allocation3 + $0x38] sm:$0xf] %v443_v18 }
 0x174   :  { %v636_v17 = vpop.permute.xlu0 %635  ;;  %v416_v20 = vpop.permute.xlu1 %415 }
 0x175   :  { %v641_v19 = vsel %vm441_vm7, %v634_v56, %v636_v17  ;;  %v801_v12 = vld [vmem:[#allocation3 + $0x60] sm:$0xff] }
 0x176   :  { %647 = vst [vmem:[#allocation3 + $0x48] sm:$0xf] %v641_v19  ;;  %v1716_v19 = vld [vmem:[%s1823_s1] sm:$0x7]  ;;  %s1321_s1 = smov 124  }
 0x178   :  { %v580_v21 = vpop.permute.xlu0 %579  ;;  %v464_v23 = vpop.permute.xlu1 %463 }
 0x179   :  { %v586_v22 = vsel %vm585_vm14, %v578_v59, %v580_v21  ;;  %v807_v7 = vld [vmem:[#allocation3 + $0x90] sm:$0xff] }
 0x17a   :  { %592 = vst [vmem:[#allocation3 + $0xc0] sm:$0xf] %v586_v22  ;;  %v1210_v14 = vpack.c.bf16 %v807_v7, %v801_v12 }
 0x17c   :  { %v1668_v24 = vpop.permute.xlu0 %681  ;;  %v1672_v29 = vpop.permute.xlu1 %581 }
 0x17d   :  { %v687_v25 = vsel %vm489_vm5, %v680_v58, %v1668_v24  ;;  %v798_v27 = vld [vmem:[#allocation3 + $0x48] sm:$0xff]  ;;  %v587_v31 = vsel %vm585_vm14, %v580_v21, %v1672_v29 }
 0x17e   :  { %693 = vst [vmem:[#allocation3 + $0x78] sm:$0xf] %v687_v25  ;;  %v1212_v28 = vpack.c.bf16 %v798_v27, %v792_v26  ;;  %593 = vst [vmem:[#allocation3 + $0xc8] sm:$0xf] %v587_v31 }
 0x180   :  { %1213 = vmatprep.subr.bf16.mxu1 %v1212_v28  ;;  %v1674_v30 = vpop.permute.xlu0 %485  ;;  %v617_v33 = vpop.permute.xlu1 %616 }
 0x181   :  { %v491_v32 = vsel %vm489_vm5, %v484_v60, %v1674_v30  ;;  %v813_v22 = vld [vmem:[#allocation3 + $0xc0] sm:$0xff] }
 0x182   :  { %497 = vst [vmem:[#allocation3 + $0x68] sm:$0xf] %v491_v32 }
 0x184   :  { %v1680_v34 = vpop.permute.xlu0 %533  ;;  %v663_v36 = vpop.permute.xlu1 %662 }
 0x185   :  { %v539_v35 = vsel %vm537_vm4, %v532_v0, %v1680_v34  ;;  %v789_v0 = vld [vmem:[#allocation3] sm:$0xff]  ;;  %v814_v18 = vld [vmem:[#allocation3 + $0xc8] sm:$0xff] }
 0x186   :  { %545 = vst [vmem:[#allocation3 + $0x98] sm:$0xf] %v539_v35 }
 0x188   :  { %v638_v37 = vpop.permute.xlu0 %637  ;;  %v414_v39 = vpop.permute.xlu1 %413 }
 0x189   :  { %v642_v38 = vsel %vm441_vm7, %v636_v17, %v638_v37  ;;  %v419_v41 = vsel %vm417_vm15, %v1631_v50, %v414_v39  ;;  %v420_v42 = vsel %vm417_vm15, %v414_v39, %v416_v20 }
 0x18a   :  { %648 = vst [vmem:[#allocation3 + $0x50] sm:$0xf] %v642_v38  ;;  %425 = vst [vmem:[#allocation3 + $0x8] sm:$0xf0] %v419_v41 }
 0x18b   :  { %426 = vst [vmem:[#allocation3 + $0x10] sm:$0xf0] %v420_v42 }
 0x18c   :  { %v1685_v40 = vpop.permute.xlu0 %509  ;;  %v462_v44 = vpop.permute.xlu1 %461 }
 0x18d   :  { %v515_v43 = vsel %vm513_vm3, %v1629_v49, %v1685_v40  ;;  %v467_v46 = vsel %vm465_vm0, %v1639_v52, %v462_v44  ;;  %v468_v47 = vsel %vm465_vm0, %v462_v44, %v464_v23  ;;  %v795_v52 = vld [vmem:[#allocation3 + $0x30] sm:$0xff] }
 0x18e   :  { %521 = vst [vmem:[#allocation3 + $0x68] sm:$0xf0] %v515_v43  ;;  %473 = vst [vmem:[#allocation3 + $0x38] sm:$0xf0] %v467_v46  ;;  %v1206_v2 = vpack.c.bf16 %v795_v52, %v789_v0 }
 0x18f   :  { %474 = vst [vmem:[#allocation3 + $0x40] sm:$0xf0] %v468_v47 }
 0x190   :  { %v1693_v45 = vpop.permute.xlu0 %557  ;;  %v640_v50 = vpop.permute.xlu1 %639 }
 0x191   :  { %v563_v48 = vsel %vm561_vm8, %v1635_v51, %v1693_v45  ;;  %v643_v53 = vsel %vm441_vm7, %v638_v37, %v640_v50  ;;  %v790_v51 = vld [vmem:[#allocation3 + $0x8] sm:$0xff] }
 0x192   :  { %569 = vst [vmem:[#allocation3 + $0x98] sm:$0xf0] %v563_v48  ;;  %649 = vst [vmem:[#allocation3 + $0x58] sm:$0xf] %v643_v53  ;;  %v791_v9 = vld [vmem:[#allocation3 + $0x10] sm:$0xff] }
 0x194   :  { %v440_v49 = vpop.permute.xlu0 %439  ;;  %v726_v56 = vpop.permute.xlu1 %725 }
 0x195   :  { %v444_v54 = vsel %vm441_vm7, %v438_v16, %v440_v49  ;;  %v796_v61 = vld [vmem:[#allocation3 + $0x38] sm:$0xff]  ;;  %v802_v3 = vld [vmem:[#allocation3 + $0x68] sm:$0xff]  ;;  %vm1104_vm7 = vcmask 916480  }
 0x196   :  { %450 = vst [vmem:[#allocation3 + $0x40] sm:$0xf] %v444_v54  ;;  %v1204_v63 = vpack.c.bf16 %v796_v61, %v790_v51 }
 0x198   :  { %v615_v58 = vpop.permute.xlu0 %614  ;;  %v749_v4 = vpop.permute.xlu1 %748  ;;  %1205 = vmatprep.subr.bf16.mxu0 %v1204_v63 }
 0x199   :  { %v619_v59 = vsel %vm417_vm15, %v1643_v55, %v615_v58  ;;  %v620_v60 = vsel %vm417_vm15, %v615_v58, %v617_v33  ;;  %v808_v62 = vld [vmem:[#allocation3 + $0x98] sm:$0xff]  ;;  %1207 = vmatpush1.bf16.msra.mxu0 %v1206_v2 }
 0x19a   :  { %625 = vst [vmem:[#allocation3 + $0x20] sm:$0xf0] %v619_v59  ;;  %626 = vst [vmem:[#allocation3 + $0x28] sm:$0xf0] %v620_v60  ;;  %v1208_v6 = vpack.c.bf16 %v808_v62, %v802_v3 }
 0x19c   :  { %v661_v5 = vpop.permute.xlu0 %660  ;;  %1209 = vmatprep.subr.bf16.mxu0 %v1208_v6  ;;  %v488_v15 = vpop.permute.xlu1 %487 }
 0x19d   :  { %v665_v8 = vsel %vm465_vm0, %v1646_v57, %v661_v5  ;;  %v666_v55 = vsel %vm465_vm0, %v661_v5, %v663_v36  ;;  %v797_v10 = vld [vmem:[#allocation3 + $0x40] sm:$0xff]  ;;  %v492_v17 = vsel %vm489_vm5, %v1674_v30, %v488_v15  ;;  %1211 = vmatpush1.bf16.msra.mxu0 %v1210_v14 }
 0x19e   :  { %671 = vst [vmem:[#allocation3 + $0x50] sm:$0xf0] %v665_v8  ;;  %672 = vst [vmem:[#allocation3 + $0x58] sm:$0xf0] %v666_v55  ;;  %v1214_v11 = vpack.c.bf16 %v797_v10, %v791_v9  ;;  %831 = vmatprep.subr.mxu0 %v814_v18 }
 0x19f   :  { %498 = vst [vmem:[#allocation3 + $0x70] sm:$0xf] %v492_v17 }
 0x1a0   :  { %1215 = vmatpush1.bf16.msra.mxu1 %v1214_v11  ;;  %v705_v16 = vpop.permute.xlu0 %704  ;;  %v536_v20 = vpop.permute.xlu1 %535 }
 0x1a1   :  { %v710_v57 = vsel %vm513_vm3, %v1661_v13, %v705_v16  ;;  %v794_v23 = vld [vmem:[#allocation3 + $0x28] sm:$0xff]  ;;  %v540_v25 = vsel %vm537_vm4, %v1680_v34, %v536_v20  ;;  %832 = vmatpush1.msra.mxu0 %v813_v22  ;;  %v793_v27 = vld [vmem:[#allocation3 + $0x20] sm:$0xff] }
 0x1a2   :  { %716 = vst [vmem:[#allocation3 + $0x78] sm:$0xf0] %v710_v57  ;;  %546 = vst [vmem:[#allocation3 + $0xa0] sm:$0xf] %v540_v25  ;;  %1200 = vmatmul.mubr.msk.f32.vlgmr.msra.gmra.mrb[0].mxu0 %vm819_vm10, %v1716_v19 }
 0x1a3   :  { %1029 = vmatprep.mubr.f32.mxu0 %v1288_v1 }
 0x1a4   :  { %v728_v21 = vpop.permute.xlu0 %727  ;;  %v684_v32 = vpop.permute.xlu1 %683 }
 0x1a5   :  { %v733_v13 = vsel %vm537_vm4, %v726_v56, %v728_v21  ;;  %v800_v26 = vld [vmem:[#allocation3 + $0x58] sm:$0xff]  ;;  %v799_v28 = vld [vmem:[#allocation3 + $0x50] sm:$0xff]  ;;  %v688_v34 = vsel %vm489_vm5, %v1668_v24, %v684_v32 }
 0x1a6   :  { %739 = vst [vmem:[#allocation3 + $0xa8] sm:$0xf] %v733_v13  ;;  %v1220_v30 = vpack.c.bf16 %v800_v26, %v794_v23  ;;  %v1222_v31 = vpack.c.bf16 %v799_v28, %v793_v27  ;;  %694 = vst [vmem:[#allocation3 + $0x80] sm:$0xf] %v688_v34 }
 0x1a8   :  { %1221 = vmatprep.subr.bf16.mxu0 %v1220_v30  ;;  %v751_v33 = vpop.permute.xlu0 %750  ;;  %v707_v36 = vpop.permute.xlu1 %706 }
 0x1a9   :  { %v756_v35 = vsel %vm561_vm8, %v749_v4, %v751_v33  ;;  %1223 = vmatpush1.bf16.msra.mxu0 %v1222_v31  ;;  %v711_v38 = vsel %vm513_vm3, %v705_v16, %v707_v36  ;;  %v804_v43 = vld [vmem:[#allocation3 + $0x78] sm:$0xff] }
 0x1aa   :  { %762 = vst [vmem:[#allocation3 + $0xa8] sm:$0xf0] %v756_v35  ;;  %717 = vst [vmem:[#allocation3 + $0x80] sm:$0xf0] %v711_v38 }
 0x1ac   :  { %v512_v37 = vpop.permute.xlu0 %511  ;;  %v730_v1 = vpop.permute.xlu1 %729 }
 0x1ad   :  { %v516_v39 = vsel %vm513_vm3, %v1685_v40, %v512_v37  ;;  %v734_v42 = vsel %vm537_vm4, %v728_v21, %v730_v1 }
 0x1ae   :  { %522 = vst [vmem:[#allocation3 + $0x70] sm:$0xf0] %v516_v39  ;;  %740 = vst [vmem:[#allocation3 + $0xb0] sm:$0xf] %v734_v42 }
 0x1b0   :  { %v560_v41 = vpop.permute.xlu0 %559  ;;  %v753_v47 = vpop.permute.xlu1 %752 }
 0x1b1   :  { %v564_v24 = vsel %vm561_vm8, %v1693_v45, %v560_v41  ;;  %v810_v44 = vld [vmem:[#allocation3 + $0xa8] sm:$0xff]  ;;  %v757_v50 = vsel %vm561_vm8, %v751_v33, %v753_v47  ;;  %v805_v55 = vld [vmem:[#allocation3 + $0x80] sm:$0xff] }
 0x1b2   :  { %570 = vst [vmem:[#allocation3 + $0xa0] sm:$0xf0] %v564_v24  ;;  %v1216_v46 = vpack.c.bf16 %v810_v44, %v804_v43  ;;  %763 = vst [vmem:[#allocation3 + $0xb0] sm:$0xf0] %v757_v50 }
 0x1b4   :  { %1217 = vmatprep.subr.bf16.mxu1 %v1216_v46  ;;  %v686_v48 = vpop.permute.xlu0 %685  ;;  %v772_v49 = vpop.permute.xlu1 %771 }
 0x1b5   :  { %v689_v40 = vsel %vm489_vm5, %v684_v32, %v686_v48  ;;  %v803_v56 = vld [vmem:[#allocation3 + $0x70] sm:$0xff]  ;;  %vm1102_vm5 = vcmask 785408  }
 0x1b6   :  { %695 = vst [vmem:[#allocation3 + $0x88] sm:$0xf] %v689_v40 }
 0x1b8   :  { %v709_v53 = vpop.permute.xlu0 %708  ;;  %v584_v52 = vpop.permute.xlu1 %583 }
 0x1b9   :  { %v712_v54 = vsel %vm513_vm3, %v707_v36, %v709_v53  ;;  %v809_v45 = vld [vmem:[#allocation3 + $0xa0] sm:$0xff]  ;;  %v588_v60 = vsel %vm585_vm14, %v1672_v29, %v584_v52  ;;  %v811_v4 = vld [vmem:[#allocation3 + $0xb0] sm:$0xff] }
 0x1ba   :  { %718 = vst [vmem:[#allocation3 + $0x88] sm:$0xf0] %v712_v54  ;;  %v1218_v58 = vpack.c.bf16 %v809_v45, %v803_v56  ;;  %594 = vst [vmem:[#allocation3 + $0xd0] sm:$0xf] %v588_v60  ;;  %v1226_v9 = vpack.c.bf16 %v811_v4, %v805_v55 }
 0x1bc   :  { %1219 = vmatpush1.bf16.msra.mxu1 %v1218_v58  ;;  %v732_v59 = vpop.permute.xlu0 %731  ;;  %v778_v2 = vpop.permute.xlu1 %777 }
 0x1bd   :  { %v735_v51 = vsel %vm537_vm4, %v730_v1, %v732_v59 }
 0x1be   :  { %741 = vst [vmem:[#allocation3 + $0xb8] sm:$0xf] %v735_v51 }
 0x1c0   :  { %v755_v61 = vpop.permute.xlu0 %754 }
 0x1c1   :  { %v758_v62 = vsel %vm561_vm8, %v753_v47, %v755_v61  ;;  %v806_v29 = vld [vmem:[#allocation3 + $0x88] sm:$0xff]  ;;  %v815_v11 = vld [vmem:[#allocation3 + $0xd0] sm:$0xff] }
 0x1c2   :  { %764 = vst [vmem:[#allocation3 + $0xb8] sm:$0xf0] %v758_v62 }
 0x1c4   :  { %v774_v63 = vpop.permute.xlu0 %773 }
 0x1c5   :  { %v779_v0 = vsel %vm585_vm14, %v772_v49, %v774_v63 }
 0x1c6   :  { %785 = vst [vmem:[#allocation3 + $0xd8] sm:$0xf] %v779_v0 }
 0x1c8   :  { %v776_v3 = vpop.permute.xlu0 %775 }
 0x1c9   :  { %v780_v5 = vsel %vm585_vm14, %v774_v63, %v776_v3  ;;  %v781_v6 = vsel %vm585_vm14, %v776_v3, %v778_v2  ;;  %v812_v7 = vld [vmem:[#allocation3 + $0xb8] sm:$0xff] }
 0x1ca   :  { %786 = vst [vmem:[#allocation3 + $0xe0] sm:$0xf] %v780_v5  ;;  %787 = vst [vmem:[#allocation3 + $0xe8] sm:$0xf] %v781_v6  ;;  %v1224_v8 = vpack.c.bf16 %v812_v7, %v806_v29 }
 0x1cc   :  { %1225 = vmatprep.subr.bf16.mxu0 %v1224_v8 }
 0x1cd   :  { %1227 = vmatpush1.bf16.msra.mxu0 %v1226_v9  ;;  %v816_v10 = vld [vmem:[#allocation3 + $0xd8] sm:$0xff] }
 0x1ce   :  { %902 = vmatprep.subr.mxu1 %v816_v10 }
 0x1cf   :  { %903 = vmatpush1.msra.mxu1 %v815_v11 }
 0x1d0   :  { %1201 = vmatmul.mubr.msk.f32.vlgmr.msra.gmra.mrb[0].mxu1 %vm819_vm10, %v1716_v19 }
 0x1d1   :  { %v818_v12 = vld [vmem:[#allocation3 + $0xe8] sm:$0xff]  ;;  %v817_v14 = vld [vmem:[#allocation3 + $0xe0] sm:$0xff] }
 0x1d2   :  { %973 = vmatprep.subr.mxu0 %v818_v12 }
 0x1d3   :  { %974 = vmatpush1.msra.mxu0 %v817_v14 }
 0x1d4   :  { %1202 = vmatmul.mubr.msk.f32.vlgmr.msra.gmra.mrb[2].mxu0 %vm819_vm10, %v1716_v19 }
 0x275   :  { %v1747_v15 = vpop.f32.mrb[0].mxu0 }
 0x276   :  { %1037 = vrot.lane.b32.xlu0 %v1747_v15, %s1313_s8  ;;  %v891_v16 = vpop.f32.mrb[1].mxu0 }
 0x27a   :  { %1040 = vrot.lane.b32.xlu0 %v1747_v15, %s1321_s1 }
 0x2a3   :  { %v960_v17 = vpop.f32.mrb[0].mxu1 }
 0x2a4   :  { %1084 = vrot.lane.b32.xlu1 %v960_v17, %s1322_s18  ;;  %v1753_v57 = vpop.f32.mrb[1].mxu1 }
 0x2a5   :  { %1124 = vrot.lane.b32.xlu0 %v1753_v57, %s1321_s1 }
 0x2a7   :  { %v1031_v18 = vpop.f32.mrb[2].mxu0 }
 0x2a8   :  { %1121 = vrot.lane.b32.xlu1 %v1753_v57, %s1313_s8  ;;  %v1033_v19 = vpop.f32.mrb[3].mxu0 }
 0x2a9   :  { %1043 = vrot.lane.b32.xlu0 %v1747_v15, %s1323_s19 }
 0x2ac   :  { %1056 = vrot.lane.b32.xlu1 %v1747_v15, %s1324_s20 }
 0x2ad   :  { %1127 = vrot.lane.b32.xlu0 %v1753_v57, %s1323_s19 }
 0x2b0   :  { %1136 = vrot.lane.b32.xlu1 %v1753_v57, %s1325_s21 }
 0x2b1   :  { %1046 = vrot.lane.b32.xlu0 %v1747_v15, %s1326_s22 }
 0x2b4   :  { %1063 = vrot.lane.b32.xlu1 %v891_v16, %s1327_s23 }
 0x2b5   :  { %1130 = vrot.lane.b32.xlu0 %v1753_v57, %s1326_s22 }
 0x2b8   :  { %1069 = vrot.lane.b32.xlu1 %v891_v16, %s1315_s10 }
 0x2b9   :  { %1049 = vrot.lane.b32.xlu0 %v1747_v15, %s1328_s0 }
 0x2bc   :  { %1072 = vrot.lane.b32.xlu1 %v891_v16, %s1329_s24 }
 0x2bd   :  { %1133 = vrot.lane.b32.xlu0 %v1753_v57, %s1328_s0 }
 0x2c0   :  { %1075 = vrot.lane.b32.xlu1 %v891_v16, %s1330_s25 }
 0x2c1   :  { %1052 = vrot.lane.b32.xlu0 %v1747_v15, %s1325_s21 }
 0x2c4   :  { %1078 = vrot.lane.b32.xlu1 %v891_v16, %s1331_s26 }
 0x2c5   :  { %1140 = vrot.lane.b32.xlu0 %v1753_v57, %s1324_s20 }
 0x2c8   :  { %1149 = vrot.lane.b32.xlu1 %v1031_v18, %s1316_s11 }
 0x2c9   :  { %1066 = vrot.lane.b32.xlu0 %v891_v16, %s1316_s11 }
 0x2cc   :  { %1152 = vrot.lane.b32.xlu1 %v1031_v18, %s1315_s10 }
 0x2cd   :  { %1082 = vrot.lane.b32.xlu0 %v891_v16, %s1322_s18 }
 0x2d0   :  { %1155 = vrot.lane.b32.xlu1 %v1031_v18, %s1329_s24 }
 0x2d1   :  { %1058 = vrot.lane.b32.xlu0 %v891_v16, %s1324_s20 }
 0x2d4   :  { %1158 = vrot.lane.b32.xlu1 %v1031_v18, %s1330_s25 }
 0x2d5   :  { %1146 = vrot.lane.b32.xlu0 %v1031_v18, %s1327_s23 }
 0x2d8   :  { %1161 = vrot.lane.b32.xlu1 %v1031_v18, %s1331_s26 }
 0x2d9   :  { %1165 = vrot.lane.b32.xlu0 %v1031_v18, %s1322_s18 }
 0x2dc   :  { %1142 = vrot.lane.b32.xlu1 %v1031_v18, %s1324_s20 }
 0x2dd   :  { %1089 = vrot.lane.b32.xlu0 %v960_v17, %s1332_s27 }
 0x2e0   :  { %1167 = vrot.lane.b32.xlu1 %v1033_v19, %s1322_s18 }
 0x2e4   :  { %1171 = vrot.lane.b32.xlu1 %v1033_v19, %s1332_s27 }
 0x2e8   :  { %v1038_v20 = vpop.permute.xlu0 %1037 }
 0x2e9   :  { %v1093_v53 = vsel %vm1092_vm9, %v1747_v15, %v1038_v20 }
 0x2ec   :  { %v1041_v21 = vpop.permute.xlu0 %1040 }
 0x2ed   :  { %v1095_v54 = vsel %vm1094_vm11, %v1093_v53, %v1041_v21 }
 0x316   :  { %v1085_v22 = vpop.permute.xlu1 %1084 }
 0x317   :  { %v1125_v23 = vpop.permute.xlu0 %1124 }
 0x31a   :  { %v1122_v25 = vpop.permute.xlu1 %1121 }
 0x31b   :  { %v1044_v13 = vpop.permute.xlu0 %1043  ;;  %v1174_v58 = vsel %vm1092_vm9, %v1753_v57, %v1122_v25 }
 0x31c   :  { %v1097_v52 = vsel %vm1096_vm6, %v1095_v54, %v1044_v13  ;;  %v1175_v3 = vsel %vm1094_vm11, %v1174_v58, %v1125_v23 }
 0x31e   :  { %v1057_v26 = vpop.permute.xlu1 %1056 }
 0x31f   :  { %v1128_v27 = vpop.permute.xlu0 %1127 }
 0x320   :  { %v1176_v5 = vsel %vm1096_vm6, %v1175_v3, %v1128_v27 }
 0x322   :  { %v1779_v28 = vpop.permute.xlu1 %1136 }
 0x323   :  { %v1047_v30 = vpop.permute.xlu0 %1046 }
 0x324   :  { %v1099_v60 = vsel %vm1098_vm13, %v1097_v52, %v1047_v30 }
 0x326   :  { %v1064_v31 = vpop.permute.xlu1 %1063 }
 0x327   :  { %v1131_v32 = vpop.permute.xlu0 %1130 }
 0x328   :  { %v1177_v7 = vsel %vm1098_vm13, %v1176_v5, %v1131_v32 }
 0x32a   :  { %v1070_v33 = vpop.permute.xlu1 %1069 }
 0x32b   :  { %v1050_v34 = vpop.permute.xlu0 %1049 }
 0x32c   :  { %v1101_v62 = vsel %vm1100_vm12, %v1099_v60, %v1050_v34 }
 0x32e   :  { %v1073_v35 = vpop.permute.xlu1 %1072 }
 0x32f   :  { %v1134_v36 = vpop.permute.xlu0 %1133 }
 0x330   :  { %v1178_v10 = vsel %vm1100_vm12, %v1177_v7, %v1134_v36 }
 0x331   :  { %v1179_v16 = vsel %vm1102_vm5, %v1178_v10, %v1779_v28 }
 0x332   :  { %v1076_v37 = vpop.permute.xlu1 %1075 }
 0x333   :  { %v1053_v38 = vpop.permute.xlu0 %1052 }
 0x334   :  { %v1103_v4 = vsel %vm1102_vm5, %v1101_v62, %v1053_v38 }
 0x336   :  { %v1079_v39 = vpop.permute.xlu1 %1078 }
 0x337   :  { %v1141_v1 = vpop.permute.xlu0 %1140 }
 0x33a   :  { %v1150_v41 = vpop.permute.xlu1 %1149 }
 0x33b   :  { %v1067_v42 = vpop.permute.xlu0 %1066 }
 0x33c   :  { %v1106_v44 = vsel %vm1092_vm9, %v1064_v31, %v1067_v42 }
 0x33d   :  { %v1107_v47 = vsel %vm1094_vm11, %v1106_v44, %v1070_v33 }
 0x33e   :  { %v1153_v24 = vpop.permute.xlu1 %1152  ;;  %v1108_v50 = vsel %vm1096_vm6, %v1107_v47, %v1073_v35 }
 0x33f   :  { %v1083_v43 = vpop.permute.xlu0 %1082  ;;  %v1109_v45 = vsel %vm1098_vm13, %v1108_v50, %v1076_v37 }
 0x340   :  { %v1087_v63 = vsel %vm1086_vm1, %v1083_v43, %v1085_v22  ;;  %v1110_v2 = vsel %vm1100_vm12, %v1109_v45, %v1079_v39 }
 0x341   :  { %v1111_v55 = vsel %vm1102_vm5, %v1110_v2, %v1087_v63 }
 0x342   :  { %v1156_v46 = vpop.permute.xlu1 %1155 }
 0x343   :  { %v1059_v48 = vpop.permute.xlu0 %1058 }
 0x344   :  { %v1061_v51 = vsel %vm1060_vm2, %v1057_v26, %v1059_v48 }
 0x345   :  { %v1105_v6 = vsel %vm1104_vm7, %v1103_v4, %v1061_v51 }
 0x346   :  { %v1159_v40 = vpop.permute.xlu1 %1158  ;;  %1280 = vtanh.f32 %v1105_v6 }
 0x347   :  { %v1147_v49 = vpop.permute.xlu0 %1146 }
 0x348   :  { %v1181_v56 = vsel %vm1092_vm9, %v1147_v49, %v1150_v41 }
 0x349   :  { %v1182_v0 = vsel %vm1094_vm11, %v1181_v56, %v1153_v24 }
 0x34a   :  { %v1162_v59 = vpop.permute.xlu1 %1161  ;;  %v1183_v8 = vsel %vm1096_vm6, %v1182_v0, %v1156_v46 }
 0x34b   :  { %v1166_v61 = vpop.permute.xlu0 %1165  ;;  %v1184_v14 = vsel %vm1098_vm13, %v1183_v8, %v1159_v40 }
 0x34c   :  { %v1185_v18 = vsel %vm1100_vm12, %v1184_v14, %v1162_v59 }
 0x34e   :  { %v1143_v29 = vpop.permute.xlu1 %1142 }
 0x34f   :  { %v1090_v9 = vpop.permute.xlu0 %1089  ;;  %v1144_v12 = vsel %vm1060_vm2, %v1141_v1, %v1143_v29 }
 0x350   :  { %v1112_v11 = vsel %vm1104_vm7, %v1111_v55, %v1090_v9  ;;  %v1180_v57 = vsel %vm1104_vm7, %v1179_v16, %v1144_v12  ;;  %v1281_v22 = vpop.eup %1280 }
 0x351   :  { %1282 = vtanh.f32 %v1112_v11 }
 0x352   :  { %v1168_v15 = vpop.permute.xlu1 %1167  ;;  %1284 = vtanh.f32 %v1180_v57 }
 0x353   :  { %v1169_v17 = vsel %vm1086_vm1, %v1166_v61, %v1168_v15 }
 0x354   :  { %v1186_v20 = vsel %vm1102_vm5, %v1185_v18, %v1169_v17 }
 0x356   :  { %v1172_v19 = vpop.permute.xlu1 %1171 }
 0x357   :  { %v1187_v21 = vsel %vm1104_vm7, %v1186_v20, %v1172_v19 }
 0x358   :  { %1286 = vtanh.f32 %v1187_v21 }
 0x35b   :  { %v1283_v23 = vpop.eup %1282 }
 0x35c   :  { %v1117_v25 = vcombine.low %v1281_v22, %v1283_v23  ;;  %v1285_v13 = vpop.eup %1284 }
 0x35e   :  { %1119 = vst [vmem:[%s1824_s2] sm:$0x77] %v1117_v25 }
 0x362   :  { %v1287_v26 = vpop.eup %1286 }
 0x363   :  { %v1192_v27 = vcombine.low %v1285_v13, %v1287_v26 }
 0x365   :  { %1203 = vst [vmem:[%s1824_s2 + $0x8] sm:$0x77] %v1192_v27 }

</bundles_post_ra>
